<compile_context>
chip_gen: v7x
topology: tpu7x:2x2x1
jax: 0.10.0
libtpu: 0.0.40
codegen_flags: <defaults>
</compile_context>

<pallas_src>
import jax
import jax.numpy as jnp
from jax.experimental import pallas as pl
from jax.experimental.pallas import tpu as pltpu


# ----------------------------------------------------------------------------
# Fused Pallas kernel: one grid step == one image.
#
# Layouts (chosen so every step is a plain slice -- no in-kernel relayouts):
#   activations : (H, C*W) f32, "channel-planar": column index = c*W + w
#   banded conv : (K, Cin*W, Cout*W); row = ci*W + u, col = co*W + w, entry =
#                 weight[co, ci, kh, u - w + p] (zero outside the band), so the
#                 width taps and the width zero-padding live in the weights and
#                 each conv is just   sum_kh  padded_rows[kh:kh+H, :] @ B[kh].
#   biases      : (1, Cout*W) f32 (bias repeated W times, channel-planar)
# ----------------------------------------------------------------------------
def _srresnet_kernel(x_ref, shift_ref, b1w_ref, b1b_ref, b2w_ref, b2b_ref,
                     b3w_ref, b3b_ref, o_ref):
    H, W = x_ref.shape[2], x_ref.shape[3]
    n_colors = x_ref.shape[1]

    def conv_banded(act, bw_ref, bb_ref, relu):
        # act: (H, Cin*W) f32.  bw_ref: (K, Cin*W, Cout*W).  bb_ref: (1, Cout*W) f32.
        K = bw_ref.shape[0]
        p = K // 2
        cols = bw_ref.shape[2]
        # Row ("same") zero padding: tiny (p, Cin*W) zero blocks kept in vregs --
        # no VMEM halo buffers and no per-step memsets.
        zrows = jnp.zeros((p, act.shape[1]), jnp.float32)
        padded = jnp.concatenate([zrows, act, zrows], axis=0)      # (H + 2p, Cin*W)
        # Accumulator initialized with the broadcast bias (hoisted out of the loop).
        acc = jnp.broadcast_to(bb_ref[...], (H, cols))             # f32
        for kh in range(K):                                        # K matmuls / conv
            lhs = padded[kh:kh + H, :]                             # row shift only
            # bf16 (v6e/v7x) or f32 operands, always f32 accumulation; ReLU/bias
            # stay f32 (v5e has no bf16 VALU).
            acc = acc + jnp.dot(lhs.astype(bw_ref.dtype), bw_ref[kh],
                                preferred_element_type=jnp.float32)
        return jnp.maximum(acc, 0.0) if relu else acc

    # Channel-planar (H, n_colors*W) input built straight from the NCHW block
    # (lane-offset concat, no transpose/relayout), with sub_mean fused.  The
    # subtraction must stay on the un-padded interior (exact under zero "same"
    # padding) -- it cannot be folded into conv1's bias.
    planes = [x_ref[0, ci] for ci in range(n_colors)]
    x0 = jnp.concatenate(planes, axis=1) - shift_ref[...]

    a1 = conv_banded(x0, b1w_ref, b1b_ref, relu=True)    # (H, 2*n_feats*W)
    a2 = conv_banded(a1, b2w_ref, b2b_ref, relu=True)    # (H, n_feats*W)
    a3 = conv_banded(a2, b3w_ref, b3b_ref, relu=False)   # (H, n_colors*W); add_mean in bias

    # NCHW output written directly (one (H, W) slab per channel) -- no wrapper
    # transpose.  For large H*W, emit (N, C, H*W) lane-dense instead and
    # free-reshape in the wrapper.
    for co in range(o_ref.shape[1]):
        o_ref[0, co] = a3[:, co * W:(co + 1) * W].astype(o_ref.dtype)


# ----------------------------------------------------------------------------
# Wrapper
# ----------------------------------------------------------------------------
def _fused_call(x_nchw, shift, b1w, b1b, b2w, b2b, b3w, b3b):
    N, C, H, W = x_nchw.shape
    n_out = b3w.shape[2] // W
    assert b1w.shape[1] == C * W, "banded weights were built for a different W / n_colors"

    def full_vmem(a):
        return pl.BlockSpec(a.shape, lambda n, _nd=a.ndim: (0,) * _nd)

    flops = 2 * N * H * sum(int(b.shape[0]) * int(b.shape[1]) * int(b.shape[2])
                            for b in (b1w, b2w, b3w))
    bytes_accessed = int(
        x_nchw.size * x_nchw.dtype.itemsize
        + N * n_out * H * W * x_nchw.dtype.itemsize
        + sum(a.size * a.dtype.itemsize
              for a in (shift, b1w, b1b, b2w, b2b, b3w, b3b)))

    return pl.pallas_call(
        _srresnet_kernel,
        out_shape=jax.ShapeDtypeStruct((N, n_out, H, W), x_nchw.dtype),
        grid=(N,),
        in_specs=[
            pl.BlockSpec((1, C, H, W), lambda n: (n, 0, 0, 0)),
            full_vmem(shift),
            full_vmem(b1w), full_vmem(b1b),
            full_vmem(b2w), full_vmem(b2b),
            full_vmem(b3w), full_vmem(b3b),
        ],
        out_specs=pl.BlockSpec((1, n_out, H, W), lambda n: (n, 0, 0, 0)),
        compiler_params=pltpu.CompilerParams(
            dimension_semantics=("parallel",)),
        cost_estimate=pl.CostEstimate(flops=flops, transcendentals=0,
                                      bytes_accessed=bytes_accessed),
    )(x_nchw, shift, b1w, b1b, b2w, b2b, b3w, b3b)


def prepare_kernel_params(params, width, compute_dtype=jnp.float32):
    """Precompute kernel-ready tensors once (outside the hot path).

    The width-direction conv taps and the width zero-padding are folded into a
    banded matrix  B[kh, ci*W+u, co*W+w] = w[co, ci, kh, u-w+p]  (0 outside the
    band), so the in-kernel contraction depth is Cin*W instead of Cin, and the
    output columns come out channel-planar, ready to chain into the next layer
    (and to be sliced per-channel for NCHW output).
    """
    W = width
    rgb_shift = (params["rgb_range"] * params["rgb_mean"]).astype(jnp.float32)  # (3,)

    def banded(w_oihw):
        Co, Ci, K, _ = w_oihw.shape
        p = K // 2
        u = jnp.arange(W)[:, None]                      # source column u
        wv = jnp.arange(W)[None, :]                     # output column w
        kw = u - wv + p                                 # width tap index, (W, W)
        valid = (kw >= 0) & (kw < K)
        kw_c = jnp.clip(kw, 0, K - 1)
        wt = jnp.transpose(w_oihw, (2, 1, 0, 3))        # (K, Ci, Co, Kw)
        band = wt[:, :, :, kw_c]                        # (K, Ci, Co, W_u, W_w)
        band = jnp.where(valid[None, None, None], band, 0.0)
        band = jnp.transpose(band, (0, 1, 3, 2, 4))     # (K, Ci, W_u, Co, W_w)
        return band.reshape(K, Ci * W, Co * W).astype(compute_dtype)

    def planar_bias(b):                                 # (Co,) -> (1, Co*W) f32
        return jnp.repeat(b.astype(jnp.float32), W)[None, :]

    return {
        "shift": jnp.repeat(rgb_shift, W)[None, :],                  # (1, 3*W) f32
        "b1w": banded(params["w1_oihw"]), "b1b": planar_bias(params["b1"]),
        "b2w": banded(params["w2_oihw"]), "b2b": planar_bias(params["b2"]),
        "b3w": banded(params["w3_oihw"]),
        # add_mean folded exactly into conv3's bias (no ReLU after conv3).
        "b3b": planar_bias(params["b3"] + rgb_shift),
    }


def srresnet_forward(x_nchw, kparams):
    """Pallas forward pass. x_nchw: (N, n_colors, H, W) float32, NCHW like PyTorch."""
    return _fused_call(x_nchw, kparams["shift"],
                       kparams["b1w"], kparams["b1b"],
                       kparams["b2w"], kparams["b2b"],
                       kparams["b3w"], kparams["b3b"])


# ----------------------------------------------------------------------------
# Pure-JAX reference (independent correctness check)
# ----------------------------------------------------------------------------
def reference_forward(x_nchw, params):
    rgb_shift = params["rgb_range"] * params["rgb_mean"]
    x = x_nchw - rgb_shift[None, :, None, None]

    def conv(x, w_oihw, b, relu):
        y = jax.lax.conv_general_dilated(
            x, w_oihw, window_strides=(1, 1), padding="SAME",
            dimension_numbers=("NCHW", "OIHW", "NCHW"))
        y = y + b[None, :, None, None]
        return jnp.maximum(y, 0.0) if relu else y

    x = conv(x, params["w1_oihw"], params["b1"], True)
    x = conv(x, params["w2_oihw"], params["b2"], True)
    x = conv(x, params["w3_oihw"], params["b3"], False)
    return x + rgb_shift[None, :, None, None]


# ----------------------------------------------------------------------------
# Deterministic parameter init (shapes from SRResNet.__init__)
# ----------------------------------------------------------------------------
def init_params(key, n_colors=3, n_feats=8, rgb_range=1.0):
    k1, k2, k3, k4, k5, k6 = jax.random.split(key, 6)
    # PyTorch conv weight layout is OIHW: (Cout, Cin, K, K)
    w1 = 0.05 * jax.random.normal(k1, (n_feats * 2, n_colors, 9, 9), jnp.float32)
    b1 = 0.01 * jax.random.normal(k2, (n_feats * 2,), jnp.float32)
    w2 = 0.05 * jax.random.normal(k3, (n_feats, n_feats * 2, 5, 5), jnp.float32)
    b2 = 0.01 * jax.random.normal(k4, (n_feats,), jnp.float32)
    w3 = 0.05 * jax.random.normal(k5, (n_colors, n_feats, 5, 5), jnp.float32)
    b3 = 0.01 * jax.random.normal(k6, (n_colors,), jnp.float32)
    return {
        "rgb_range": jnp.float32(rgb_range),
        "rgb_mean": jnp.array([0.4488, 0.4371, 0.404], jnp.float32),
        "w1_oihw": w1, "b1": b1,
        "w2_oihw": w2, "b2": b2,
        "w3_oihw": w3, "b3": b3,
    }


if __name__ == "__main__":
    key = jax.random.PRNGKey(0)
    pkey, xkey = jax.random.split(key)
    params = init_params(pkey, n_colors=3, n_feats=8, rgb_range=1.0)

    # Small NCHW input consistent with the module (3 color channels).
    x = jax.random.uniform(xkey, (2, 3, 16, 16), jnp.float32)

    ref = jax.block_until_ready(reference_forward(x, params))
    fwd = jax.jit(srresnet_forward)

    # f32 MXU operands: strict check against the XLA reference.
    kp_f32 = prepare_kernel_params(params, width=x.shape[3], compute_dtype=jnp.float32)
    out = jax.block_until_ready(fwd(x, kp_f32))
    assert out.shape == ref.shape == (2, 3, 16, 16)
    if not jnp.allclose(out, ref, atol=2e-3, rtol=2e-3):
        raise AssertionError("Pallas SRResNet (f32 operands) does not match reference")

    # bf16 MXU operands with f32 accumulation (v6e/v7x fast path): looser tolerance.
    kp_bf16 = prepare_kernel_params(params, width=x.shape[3], compute_dtype=jnp.bfloat16)
    out_bf16 = jax.block_until_ready(fwd(x, kp_bf16))
    if not jnp.allclose(out_bf16, ref, atol=5e-2, rtol=5e-2):
        raise AssertionError("Pallas SRResNet (bf16 operands) does not match reference")

    print("KERNEL_OK")
</pallas_src>

<mosaic_0001>
module attributes {stable_mosaic.version = 11 : i64} {
  func.func @_srresnet_kernel(%arg0: i32, %arg1: memref<1x3x16x16xf32, #tpu.memory_space<vmem>>, %arg2: memref<1x48xf32, #tpu.memory_space<vmem>>, %arg3: memref<9x48x256xf32, #tpu.memory_space<vmem>>, %arg4: memref<1x256xf32, #tpu.memory_space<vmem>>, %arg5: memref<5x256x128xf32, #tpu.memory_space<vmem>>, %arg6: memref<1x128xf32, #tpu.memory_space<vmem>>, %arg7: memref<5x128x48xf32, #tpu.memory_space<vmem>>, %arg8: memref<1x48xf32, #tpu.memory_space<vmem>>, %arg9: memref<1x3x16x16xf32, #tpu.memory_space<vmem>>) attributes {dimension_semantics = [#tpu.dimension_semantics<parallel>], iteration_bounds = array<i64: 2>, scalar_prefetch = 0 : i64, scratch_operands = 0 : i64, tpu.core_type = #tpu.core_type<tc>, window_params = [{transform_indices = @transform_0, window_bounds = array<i64: 1, 3, 16, 16>}, {pipeline_mode = #tpu.pipeline_mode<synchronous>, transform_indices = @transform_1, window_bounds = array<i64: 1, 48>}, {pipeline_mode = #tpu.pipeline_mode<synchronous>, transform_indices = @transform_2, window_bounds = array<i64: 9, 48, 256>}, {pipeline_mode = #tpu.pipeline_mode<synchronous>, transform_indices = @transform_3, window_bounds = array<i64: 1, 256>}, {pipeline_mode = #tpu.pipeline_mode<synchronous>, transform_indices = @transform_4, window_bounds = array<i64: 5, 256, 128>}, {pipeline_mode = #tpu.pipeline_mode<synchronous>, transform_indices = @transform_5, window_bounds = array<i64: 1, 128>}, {pipeline_mode = #tpu.pipeline_mode<synchronous>, transform_indices = @transform_6, window_bounds = array<i64: 5, 128, 48>}, {pipeline_mode = #tpu.pipeline_mode<synchronous>, transform_indices = @transform_7, window_bounds = array<i64: 1, 48>}, {transform_indices = @transform_8, window_bounds = array<i64: 1, 3, 16, 16>}]} {
    %c0 = arith.constant 0 : index
    %c0_0 = arith.constant 0 : index
    %c0_1 = arith.constant 0 : index
    %c0_2 = arith.constant 0 : index
    %0 = vector.load %arg1[%c0, %c0_0, %c0_1, %c0_2] : memref<1x3x16x16xf32, #tpu.memory_space<vmem>>, vector<1x1x16x16xf32>
    %1 = vector.shape_cast %0 : vector<1x1x16x16xf32> to vector<16x16xf32>
    %c0_3 = arith.constant 0 : index
    %c1 = arith.constant 1 : index
    %c0_4 = arith.constant 0 : index
    %c0_5 = arith.constant 0 : index
    %2 = vector.load %arg1[%c0_3, %c1, %c0_4, %c0_5] : memref<1x3x16x16xf32, #tpu.memory_space<vmem>>, vector<1x1x16x16xf32>
    %3 = vector.shape_cast %2 : vector<1x1x16x16xf32> to vector<16x16xf32>
    %c0_6 = arith.constant 0 : index
    %c2 = arith.constant 2 : index
    %c0_7 = arith.constant 0 : index
    %c0_8 = arith.constant 0 : index
    %4 = vector.load %arg1[%c0_6, %c2, %c0_7, %c0_8] : memref<1x3x16x16xf32, #tpu.memory_space<vmem>>, vector<1x1x16x16xf32>
    %5 = vector.shape_cast %4 : vector<1x1x16x16xf32> to vector<16x16xf32>
    %6 = tpu.concatenate %1, %3, %5 in 1 : vector<16x16xf32>, vector<16x16xf32>, vector<16x16xf32> -> vector<16x48xf32>
    %c0_9 = arith.constant 0 : index
    %c0_10 = arith.constant 0 : index
    %7 = vector.load %arg2[%c0_9, %c0_10] : memref<1x48xf32, #tpu.memory_space<vmem>>, vector<1x48xf32>
    %8 = vector.broadcast %7 : vector<1x48xf32> to vector<16x48xf32>
    %9 = arith.subf %6, %8 : vector<16x48xf32>
    %cst = arith.constant 0.000000e+00 : f32
    %10 = vector.broadcast %cst : f32 to vector<4x48xf32>
    %11 = tpu.concatenate %10, %9, %10 in 0 : vector<4x48xf32>, vector<16x48xf32>, vector<4x48xf32> -> vector<24x48xf32>
    %c0_11 = arith.constant 0 : index
    %c0_12 = arith.constant 0 : index
    %12 = vector.load %arg4[%c0_11, %c0_12] : memref<1x256xf32, #tpu.memory_space<vmem>>, vector<1x256xf32>
    %13 = vector.shape_cast %12 : vector<1x256xf32> to vector<1x256xf32>
    %14 = vector.broadcast %13 : vector<1x256xf32> to vector<16x256xf32>
    %15 = vector.extract_strided_slice %11 {offsets = [0, 0], sizes = [16, 48], strides = [1, 1]} : vector<24x48xf32> to vector<16x48xf32>
    %c0_13 = arith.constant 0 : index
    %c0_14 = arith.constant 0 : index
    %c0_15 = arith.constant 0 : index
    %16 = vector.load %arg3[%c0_13, %c0_14, %c0_15] : memref<9x48x256xf32, #tpu.memory_space<vmem>>, vector<1x48x256xf32>
    %17 = vector.shape_cast %16 : vector<1x48x256xf32> to vector<48x256xf32>
    %cst_16 = arith.constant dense<0.000000e+00> : vector<16x256xf32>
    %18 = tpu.matmul %15, %17, %cst_16 {dimension_numbers = #tpu.dot_dimension_numbers<[1], [0], [0], [1], [0, 0, 1, 1], [], []>} : vector<16x48xf32>, vector<48x256xf32>, vector<16x256xf32> -> vector<16x256xf32>
    %19 = arith.addf %14, %18 : vector<16x256xf32>
    %20 = vector.extract_strided_slice %11 {offsets = [1, 0], sizes = [16, 48], strides = [1, 1]} : vector<24x48xf32> to vector<16x48xf32>
    %c1_17 = arith.constant 1 : index
    %c0_18 = arith.constant 0 : index
    %c0_19 = arith.constant 0 : index
    %21 = vector.load %arg3[%c1_17, %c0_18, %c0_19] : memref<9x48x256xf32, #tpu.memory_space<vmem>>, vector<1x48x256xf32>
    %22 = vector.shape_cast %21 : vector<1x48x256xf32> to vector<48x256xf32>
    %cst_20 = arith.constant dense<0.000000e+00> : vector<16x256xf32>
    %23 = tpu.matmul %20, %22, %cst_20 {dimension_numbers = #tpu.dot_dimension_numbers<[1], [0], [0], [1], [0, 0, 1, 1], [], []>} : vector<16x48xf32>, vector<48x256xf32>, vector<16x256xf32> -> vector<16x256xf32>
    %24 = arith.addf %19, %23 : vector<16x256xf32>
    %25 = vector.extract_strided_slice %11 {offsets = [2, 0], sizes = [16, 48], strides = [1, 1]} : vector<24x48xf32> to vector<16x48xf32>
    %c2_21 = arith.constant 2 : index
    %c0_22 = arith.constant 0 : index
    %c0_23 = arith.constant 0 : index
    %26 = vector.load %arg3[%c2_21, %c0_22, %c0_23] : memref<9x48x256xf32, #tpu.memory_space<vmem>>, vector<1x48x256xf32>
    %27 = vector.shape_cast %26 : vector<1x48x256xf32> to vector<48x256xf32>
    %cst_24 = arith.constant dense<0.000000e+00> : vector<16x256xf32>
    %28 = tpu.matmul %25, %27, %cst_24 {dimension_numbers = #tpu.dot_dimension_numbers<[1], [0], [0], [1], [0, 0, 1, 1], [], []>} : vector<16x48xf32>, vector<48x256xf32>, vector<16x256xf32> -> vector<16x256xf32>
    %29 = arith.addf %24, %28 : vector<16x256xf32>
    %30 = vector.extract_strided_slice %11 {offsets = [3, 0], sizes = [16, 48], strides = [1, 1]} : vector<24x48xf32> to vector<16x48xf32>
    %c3 = arith.constant 3 : index
    %c0_25 = arith.constant 0 : index
    %c0_26 = arith.constant 0 : index
    %31 = vector.load %arg3[%c3, %c0_25, %c0_26] : memref<9x48x256xf32, #tpu.memory_space<vmem>>, vector<1x48x256xf32>
    %32 = vector.shape_cast %31 : vector<1x48x256xf32> to vector<48x256xf32>
    %cst_27 = arith.constant dense<0.000000e+00> : vector<16x256xf32>
    %33 = tpu.matmul %30, %32, %cst_27 {dimension_numbers = #tpu.dot_dimension_numbers<[1], [0], [0], [1], [0, 0, 1, 1], [], []>} : vector<16x48xf32>, vector<48x256xf32>, vector<16x256xf32> -> vector<16x256xf32>
    %34 = arith.addf %29, %33 : vector<16x256xf32>
    %35 = vector.extract_strided_slice %11 {offsets = [4, 0], sizes = [16, 48], strides = [1, 1]} : vector<24x48xf32> to vector<16x48xf32>
    %c4 = arith.constant 4 : index
    %c0_28 = arith.constant 0 : index
    %c0_29 = arith.constant 0 : index
    %36 = vector.load %arg3[%c4, %c0_28, %c0_29] : memref<9x48x256xf32, #tpu.memory_space<vmem>>, vector<1x48x256xf32>
    %37 = vector.shape_cast %36 : vector<1x48x256xf32> to vector<48x256xf32>
    %cst_30 = arith.constant dense<0.000000e+00> : vector<16x256xf32>
    %38 = tpu.matmul %35, %37, %cst_30 {dimension_numbers = #tpu.dot_dimension_numbers<[1], [0], [0], [1], [0, 0, 1, 1], [], []>} : vector<16x48xf32>, vector<48x256xf32>, vector<16x256xf32> -> vector<16x256xf32>
    %39 = arith.addf %34, %38 : vector<16x256xf32>
    %40 = vector.extract_strided_slice %11 {offsets = [5, 0], sizes = [16, 48], strides = [1, 1]} : vector<24x48xf32> to vector<16x48xf32>
    %c5 = arith.constant 5 : index
    %c0_31 = arith.constant 0 : index
    %c0_32 = arith.constant 0 : index
    %41 = vector.load %arg3[%c5, %c0_31, %c0_32] : memref<9x48x256xf32, #tpu.memory_space<vmem>>, vector<1x48x256xf32>
    %42 = vector.shape_cast %41 : vector<1x48x256xf32> to vector<48x256xf32>
    %cst_33 = arith.constant dense<0.000000e+00> : vector<16x256xf32>
    %43 = tpu.matmul %40, %42, %cst_33 {dimension_numbers = #tpu.dot_dimension_numbers<[1], [0], [0], [1], [0, 0, 1, 1], [], []>} : vector<16x48xf32>, vector<48x256xf32>, vector<16x256xf32> -> vector<16x256xf32>
    %44 = arith.addf %39, %43 : vector<16x256xf32>
    %45 = vector.extract_strided_slice %11 {offsets = [6, 0], sizes = [16, 48], strides = [1, 1]} : vector<24x48xf32> to vector<16x48xf32>
    %c6 = arith.constant 6 : index
    %c0_34 = arith.constant 0 : index
    %c0_35 = arith.constant 0 : index
    %46 = vector.load %arg3[%c6, %c0_34, %c0_35] : memref<9x48x256xf32, #tpu.memory_space<vmem>>, vector<1x48x256xf32>
    %47 = vector.shape_cast %46 : vector<1x48x256xf32> to vector<48x256xf32>
    %cst_36 = arith.constant dense<0.000000e+00> : vector<16x256xf32>
    %48 = tpu.matmul %45, %47, %cst_36 {dimension_numbers = #tpu.dot_dimension_numbers<[1], [0], [0], [1], [0, 0, 1, 1], [], []>} : vector<16x48xf32>, vector<48x256xf32>, vector<16x256xf32> -> vector<16x256xf32>
    %49 = arith.addf %44, %48 : vector<16x256xf32>
    %50 = vector.extract_strided_slice %11 {offsets = [7, 0], sizes = [16, 48], strides = [1, 1]} : vector<24x48xf32> to vector<16x48xf32>
    %c7 = arith.constant 7 : index
    %c0_37 = arith.constant 0 : index
    %c0_38 = arith.constant 0 : index
    %51 = vector.load %arg3[%c7, %c0_37, %c0_38] : memref<9x48x256xf32, #tpu.memory_space<vmem>>, vector<1x48x256xf32>
    %52 = vector.shape_cast %51 : vector<1x48x256xf32> to vector<48x256xf32>
    %cst_39 = arith.constant dense<0.000000e+00> : vector<16x256xf32>
    %53 = tpu.matmul %50, %52, %cst_39 {dimension_numbers = #tpu.dot_dimension_numbers<[1], [0], [0], [1], [0, 0, 1, 1], [], []>} : vector<16x48xf32>, vector<48x256xf32>, vector<16x256xf32> -> vector<16x256xf32>
    %54 = arith.addf %49, %53 : vector<16x256xf32>
    %55 = vector.extract_strided_slice %11 {offsets = [8, 0], sizes = [16, 48], strides = [1, 1]} : vector<24x48xf32> to vector<16x48xf32>
    %c8 = arith.constant 8 : index
    %c0_40 = arith.constant 0 : index
    %c0_41 = arith.constant 0 : index
    %56 = vector.load %arg3[%c8, %c0_40, %c0_41] : memref<9x48x256xf32, #tpu.memory_space<vmem>>, vector<1x48x256xf32>
    %57 = vector.shape_cast %56 : vector<1x48x256xf32> to vector<48x256xf32>
    %cst_42 = arith.constant dense<0.000000e+00> : vector<16x256xf32>
    %58 = tpu.matmul %55, %57, %cst_42 {dimension_numbers = #tpu.dot_dimension_numbers<[1], [0], [0], [1], [0, 0, 1, 1], [], []>} : vector<16x48xf32>, vector<48x256xf32>, vector<16x256xf32> -> vector<16x256xf32>
    %59 = arith.addf %54, %58 : vector<16x256xf32>
    %cst_43 = arith.constant 0.000000e+00 : f32
    %60 = vector.broadcast %cst_43 : f32 to vector<16x256xf32>
    %61 = arith.maximumf %59, %60 : vector<16x256xf32>
    %cst_44 = arith.constant 0.000000e+00 : f32
    %62 = vector.broadcast %cst_44 : f32 to vector<2x256xf32>
    %63 = tpu.concatenate %62, %61, %62 in 0 : vector<2x256xf32>, vector<16x256xf32>, vector<2x256xf32> -> vector<20x256xf32>
    %c0_45 = arith.constant 0 : index
    %c0_46 = arith.constant 0 : index
    %64 = vector.load %arg6[%c0_45, %c0_46] : memref<1x128xf32, #tpu.memory_space<vmem>>, vector<1x128xf32>
    %65 = vector.shape_cast %64 : vector<1x128xf32> to vector<1x128xf32>
    %66 = vector.broadcast %65 : vector<1x128xf32> to vector<16x128xf32>
    %67 = vector.extract_strided_slice %63 {offsets = [0, 0], sizes = [16, 256], strides = [1, 1]} : vector<20x256xf32> to vector<16x256xf32>
    %c0_47 = arith.constant 0 : index
    %c0_48 = arith.constant 0 : index
    %c0_49 = arith.constant 0 : index
    %68 = vector.load %arg5[%c0_47, %c0_48, %c0_49] : memref<5x256x128xf32, #tpu.memory_space<vmem>>, vector<1x256x128xf32>
    %69 = vector.shape_cast %68 : vector<1x256x128xf32> to vector<256x128xf32>
    %cst_50 = arith.constant dense<0.000000e+00> : vector<16x128xf32>
    %70 = tpu.matmul %67, %69, %cst_50 {dimension_numbers = #tpu.dot_dimension_numbers<[1], [0], [0], [1], [0, 0, 1, 1], [], []>} : vector<16x256xf32>, vector<256x128xf32>, vector<16x128xf32> -> vector<16x128xf32>
    %71 = arith.addf %66, %70 : vector<16x128xf32>
    %72 = vector.extract_strided_slice %63 {offsets = [1, 0], sizes = [16, 256], strides = [1, 1]} : vector<20x256xf32> to vector<16x256xf32>
    %c1_51 = arith.constant 1 : index
    %c0_52 = arith.constant 0 : index
    %c0_53 = arith.constant 0 : index
    %73 = vector.load %arg5[%c1_51, %c0_52, %c0_53] : memref<5x256x128xf32, #tpu.memory_space<vmem>>, vector<1x256x128xf32>
    %74 = vector.shape_cast %73 : vector<1x256x128xf32> to vector<256x128xf32>
    %cst_54 = arith.constant dense<0.000000e+00> : vector<16x128xf32>
    %75 = tpu.matmul %72, %74, %cst_54 {dimension_numbers = #tpu.dot_dimension_numbers<[1], [0], [0], [1], [0, 0, 1, 1], [], []>} : vector<16x256xf32>, vector<256x128xf32>, vector<16x128xf32> -> vector<16x128xf32>
    %76 = arith.addf %71, %75 : vector<16x128xf32>
    %77 = vector.extract_strided_slice %63 {offsets = [2, 0], sizes = [16, 256], strides = [1, 1]} : vector<20x256xf32> to vector<16x256xf32>
    %c2_55 = arith.constant 2 : index
    %c0_56 = arith.constant 0 : index
    %c0_57 = arith.constant 0 : index
    %78 = vector.load %arg5[%c2_55, %c0_56, %c0_57] : memref<5x256x128xf32, #tpu.memory_space<vmem>>, vector<1x256x128xf32>
    %79 = vector.shape_cast %78 : vector<1x256x128xf32> to vector<256x128xf32>
    %cst_58 = arith.constant dense<0.000000e+00> : vector<16x128xf32>
    %80 = tpu.matmul %77, %79, %cst_58 {dimension_numbers = #tpu.dot_dimension_numbers<[1], [0], [0], [1], [0, 0, 1, 1], [], []>} : vector<16x256xf32>, vector<256x128xf32>, vector<16x128xf32> -> vector<16x128xf32>
    %81 = arith.addf %76, %80 : vector<16x128xf32>
    %82 = vector.extract_strided_slice %63 {offsets = [3, 0], sizes = [16, 256], strides = [1, 1]} : vector<20x256xf32> to vector<16x256xf32>
    %c3_59 = arith.constant 3 : index
    %c0_60 = arith.constant 0 : index
    %c0_61 = arith.constant 0 : index
    %83 = vector.load %arg5[%c3_59, %c0_60, %c0_61] : memref<5x256x128xf32, #tpu.memory_space<vmem>>, vector<1x256x128xf32>
    %84 = vector.shape_cast %83 : vector<1x256x128xf32> to vector<256x128xf32>
    %cst_62 = arith.constant dense<0.000000e+00> : vector<16x128xf32>
    %85 = tpu.matmul %82, %84, %cst_62 {dimension_numbers = #tpu.dot_dimension_numbers<[1], [0], [0], [1], [0, 0, 1, 1], [], []>} : vector<16x256xf32>, vector<256x128xf32>, vector<16x128xf32> -> vector<16x128xf32>
    %86 = arith.addf %81, %85 : vector<16x128xf32>
    %87 = vector.extract_strided_slice %63 {offsets = [4, 0], sizes = [16, 256], strides = [1, 1]} : vector<20x256xf32> to vector<16x256xf32>
    %c4_63 = arith.constant 4 : index
    %c0_64 = arith.constant 0 : index
    %c0_65 = arith.constant 0 : index
    %88 = vector.load %arg5[%c4_63, %c0_64, %c0_65] : memref<5x256x128xf32, #tpu.memory_space<vmem>>, vector<1x256x128xf32>
    %89 = vector.shape_cast %88 : vector<1x256x128xf32> to vector<256x128xf32>
    %cst_66 = arith.constant dense<0.000000e+00> : vector<16x128xf32>
    %90 = tpu.matmul %87, %89, %cst_66 {dimension_numbers = #tpu.dot_dimension_numbers<[1], [0], [0], [1], [0, 0, 1, 1], [], []>} : vector<16x256xf32>, vector<256x128xf32>, vector<16x128xf32> -> vector<16x128xf32>
    %91 = arith.addf %86, %90 : vector<16x128xf32>
    %cst_67 = arith.constant 0.000000e+00 : f32
    %92 = vector.broadcast %cst_67 : f32 to vector<16x128xf32>
    %93 = arith.maximumf %91, %92 : vector<16x128xf32>
    %cst_68 = arith.constant 0.000000e+00 : f32
    %94 = vector.broadcast %cst_68 : f32 to vector<2x128xf32>
    %95 = tpu.concatenate %94, %93, %94 in 0 : vector<2x128xf32>, vector<16x128xf32>, vector<2x128xf32> -> vector<20x128xf32>
    %c0_69 = arith.constant 0 : index
    %c0_70 = arith.constant 0 : index
    %96 = vector.load %arg8[%c0_69, %c0_70] : memref<1x48xf32, #tpu.memory_space<vmem>>, vector<1x48xf32>
    %97 = vector.shape_cast %96 : vector<1x48xf32> to vector<1x48xf32>
    %98 = vector.broadcast %97 : vector<1x48xf32> to vector<16x48xf32>
    %99 = vector.extract_strided_slice %95 {offsets = [0, 0], sizes = [16, 128], strides = [1, 1]} : vector<20x128xf32> to vector<16x128xf32>
    %c0_71 = arith.constant 0 : index
    %c0_72 = arith.constant 0 : index
    %c0_73 = arith.constant 0 : index
    %100 = vector.load %arg7[%c0_71, %c0_72, %c0_73] : memref<5x128x48xf32, #tpu.memory_space<vmem>>, vector<1x128x48xf32>
    %101 = vector.shape_cast %100 : vector<1x128x48xf32> to vector<128x48xf32>
    %cst_74 = arith.constant dense<0.000000e+00> : vector<16x48xf32>
    %102 = tpu.matmul %99, %101, %cst_74 {dimension_numbers = #tpu.dot_dimension_numbers<[1], [0], [0], [1], [0, 0, 1, 1], [], []>} : vector<16x128xf32>, vector<128x48xf32>, vector<16x48xf32> -> vector<16x48xf32>
    %103 = arith.addf %98, %102 : vector<16x48xf32>
    %104 = vector.extract_strided_slice %95 {offsets = [1, 0], sizes = [16, 128], strides = [1, 1]} : vector<20x128xf32> to vector<16x128xf32>
    %c1_75 = arith.constant 1 : index
    %c0_76 = arith.constant 0 : index
    %c0_77 = arith.constant 0 : index
    %105 = vector.load %arg7[%c1_75, %c0_76, %c0_77] : memref<5x128x48xf32, #tpu.memory_space<vmem>>, vector<1x128x48xf32>
    %106 = vector.shape_cast %105 : vector<1x128x48xf32> to vector<128x48xf32>
    %cst_78 = arith.constant dense<0.000000e+00> : vector<16x48xf32>
    %107 = tpu.matmul %104, %106, %cst_78 {dimension_numbers = #tpu.dot_dimension_numbers<[1], [0], [0], [1], [0, 0, 1, 1], [], []>} : vector<16x128xf32>, vector<128x48xf32>, vector<16x48xf32> -> vector<16x48xf32>
    %108 = arith.addf %103, %107 : vector<16x48xf32>
    %109 = vector.extract_strided_slice %95 {offsets = [2, 0], sizes = [16, 128], strides = [1, 1]} : vector<20x128xf32> to vector<16x128xf32>
    %c2_79 = arith.constant 2 : index
    %c0_80 = arith.constant 0 : index
    %c0_81 = arith.constant 0 : index
    %110 = vector.load %arg7[%c2_79, %c0_80, %c0_81] : memref<5x128x48xf32, #tpu.memory_space<vmem>>, vector<1x128x48xf32>
    %111 = vector.shape_cast %110 : vector<1x128x48xf32> to vector<128x48xf32>
    %cst_82 = arith.constant dense<0.000000e+00> : vector<16x48xf32>
    %112 = tpu.matmul %109, %111, %cst_82 {dimension_numbers = #tpu.dot_dimension_numbers<[1], [0], [0], [1], [0, 0, 1, 1], [], []>} : vector<16x128xf32>, vector<128x48xf32>, vector<16x48xf32> -> vector<16x48xf32>
    %113 = arith.addf %108, %112 : vector<16x48xf32>
    %114 = vector.extract_strided_slice %95 {offsets = [3, 0], sizes = [16, 128], strides = [1, 1]} : vector<20x128xf32> to vector<16x128xf32>
    %c3_83 = arith.constant 3 : index
    %c0_84 = arith.constant 0 : index
    %c0_85 = arith.constant 0 : index
    %115 = vector.load %arg7[%c3_83, %c0_84, %c0_85] : memref<5x128x48xf32, #tpu.memory_space<vmem>>, vector<1x128x48xf32>
    %116 = vector.shape_cast %115 : vector<1x128x48xf32> to vector<128x48xf32>
    %cst_86 = arith.constant dense<0.000000e+00> : vector<16x48xf32>
    %117 = tpu.matmul %114, %116, %cst_86 {dimension_numbers = #tpu.dot_dimension_numbers<[1], [0], [0], [1], [0, 0, 1, 1], [], []>} : vector<16x128xf32>, vector<128x48xf32>, vector<16x48xf32> -> vector<16x48xf32>
    %118 = arith.addf %113, %117 : vector<16x48xf32>
    %119 = vector.extract_strided_slice %95 {offsets = [4, 0], sizes = [16, 128], strides = [1, 1]} : vector<20x128xf32> to vector<16x128xf32>
    %c4_87 = arith.constant 4 : index
    %c0_88 = arith.constant 0 : index
    %c0_89 = arith.constant 0 : index
    %120 = vector.load %arg7[%c4_87, %c0_88, %c0_89] : memref<5x128x48xf32, #tpu.memory_space<vmem>>, vector<1x128x48xf32>
    %121 = vector.shape_cast %120 : vector<1x128x48xf32> to vector<128x48xf32>
    %cst_90 = arith.constant dense<0.000000e+00> : vector<16x48xf32>
    %122 = tpu.matmul %119, %121, %cst_90 {dimension_numbers = #tpu.dot_dimension_numbers<[1], [0], [0], [1], [0, 0, 1, 1], [], []>} : vector<16x128xf32>, vector<128x48xf32>, vector<16x48xf32> -> vector<16x48xf32>
    %123 = arith.addf %118, %122 : vector<16x48xf32>
    %124 = vector.extract_strided_slice %123 {offsets = [0, 0], sizes = [16, 16], strides = [1, 1]} : vector<16x48xf32> to vector<16x16xf32>
    %c0_91 = arith.constant 0 : index
    %c0_92 = arith.constant 0 : index
    %c0_93 = arith.constant 0 : index
    %c0_94 = arith.constant 0 : index
    %125 = vector.load %arg9[%c0_91, %c0_92, %c0_93, %c0_94] : memref<1x3x16x16xf32, #tpu.memory_space<vmem>>, vector<1x1x16x16xf32>
    %126 = vector.shape_cast %125 : vector<1x1x16x16xf32> to vector<16x16xf32>
    %127 = vector.shape_cast %124 : vector<16x16xf32> to vector<1x1x16x16xf32>
    tpu.vector_store %arg9[%c0_91, %c0_92, %c0_93, %c0_94], %127 {strides = array<i32>} : memref<1x3x16x16xf32, #tpu.memory_space<vmem>>, vector<1x1x16x16xf32>,
    %128 = vector.extract_strided_slice %123 {offsets = [0, 16], sizes = [16, 16], strides = [1, 1]} : vector<16x48xf32> to vector<16x16xf32>
    %c0_95 = arith.constant 0 : index
    %c1_96 = arith.constant 1 : index
    %c0_97 = arith.constant 0 : index
    %c0_98 = arith.constant 0 : index
    %129 = vector.load %arg9[%c0_95, %c1_96, %c0_97, %c0_98] : memref<1x3x16x16xf32, #tpu.memory_space<vmem>>, vector<1x1x16x16xf32>
    %130 = vector.shape_cast %129 : vector<1x1x16x16xf32> to vector<16x16xf32>
    %131 = vector.shape_cast %128 : vector<16x16xf32> to vector<1x1x16x16xf32>
    tpu.vector_store %arg9[%c0_95, %c1_96, %c0_97, %c0_98], %131 {strides = array<i32>} : memref<1x3x16x16xf32, #tpu.memory_space<vmem>>, vector<1x1x16x16xf32>,
    %132 = vector.extract_strided_slice %123 {offsets = [0, 32], sizes = [16, 16], strides = [1, 1]} : vector<16x48xf32> to vector<16x16xf32>
    %c0_99 = arith.constant 0 : index
    %c2_100 = arith.constant 2 : index
    %c0_101 = arith.constant 0 : index
    %c0_102 = arith.constant 0 : index
    %133 = vector.load %arg9[%c0_99, %c2_100, %c0_101, %c0_102] : memref<1x3x16x16xf32, #tpu.memory_space<vmem>>, vector<1x1x16x16xf32>
    %134 = vector.shape_cast %133 : vector<1x1x16x16xf32> to vector<16x16xf32>
    %135 = vector.shape_cast %132 : vector<16x16xf32> to vector<1x1x16x16xf32>
    tpu.vector_store %arg9[%c0_99, %c2_100, %c0_101, %c0_102], %135 {strides = array<i32>} : memref<1x3x16x16xf32, #tpu.memory_space<vmem>>, vector<1x1x16x16xf32>,
    return
  }
  func.func @transform_0(%arg0: i32) -> (i32, i32, i32, i32) {
    %c0_i32 = arith.constant 0 : i32
    %c0_i32_0 = arith.constant 0 : i32
    %c0_i32_1 = arith.constant 0 : i32
    %c0_i32_2 = arith.constant 0 : i32
    return %arg0, %c0_i32, %c0_i32_0, %c0_i32_1 : i32, i32, i32, i32
  }
  func.func @transform_1(%arg0: i32) -> (i32, i32) {
    %c0_i32 = arith.constant 0 : i32
    %c0_i32_0 = arith.constant 0 : i32
    %c0_i32_1 = arith.constant 0 : i32
    return %c0_i32, %c0_i32_0 : i32, i32
  }
  func.func @transform_2(%arg0: i32) -> (i32, i32, i32) {
    %c0_i32 = arith.constant 0 : i32
    %c0_i32_0 = arith.constant 0 : i32
    %c0_i32_1 = arith.constant 0 : i32
    %c0_i32_2 = arith.constant 0 : i32
    return %c0_i32, %c0_i32_0, %c0_i32_1 : i32, i32, i32
  }
  func.func @transform_3(%arg0: i32) -> (i32, i32) {
    %c0_i32 = arith.constant 0 : i32
    %c0_i32_0 = arith.constant 0 : i32
    %c0_i32_1 = arith.constant 0 : i32
    return %c0_i32, %c0_i32_0 : i32, i32
  }
  func.func @transform_4(%arg0: i32) -> (i32, i32, i32) {
    %c0_i32 = arith.constant 0 : i32
    %c0_i32_0 = arith.constant 0 : i32
    %c0_i32_1 = arith.constant 0 : i32
    %c0_i32_2 = arith.constant 0 : i32
    return %c0_i32, %c0_i32_0, %c0_i32_1 : i32, i32, i32
  }
  func.func @transform_5(%arg0: i32) -> (i32, i32) {
    %c0_i32 = arith.constant 0 : i32
    %c0_i32_0 = arith.constant 0 : i32
    %c0_i32_1 = arith.constant 0 : i32
    return %c0_i32, %c0_i32_0 : i32, i32
  }
  func.func @transform_6(%arg0: i32) -> (i32, i32, i32) {
    %c0_i32 = arith.constant 0 : i32
    %c0_i32_0 = arith.constant 0 : i32
    %c0_i32_1 = arith.constant 0 : i32
    %c0_i32_2 = arith.constant 0 : i32
    return %c0_i32, %c0_i32_0, %c0_i32_1 : i32, i32, i32
  }
  func.func @transform_7(%arg0: i32) -> (i32, i32) {
    %c0_i32 = arith.constant 0 : i32
    %c0_i32_0 = arith.constant 0 : i32
    %c0_i32_1 = arith.constant 0 : i32
    return %c0_i32, %c0_i32_0 : i32, i32
  }
  func.func @transform_8(%arg0: i32) -> (i32, i32, i32, i32) {
    %c0_i32 = arith.constant 0 : i32
    %c0_i32_0 = arith.constant 0 : i32
    %c0_i32_1 = arith.constant 0 : i32
    %c0_i32_2 = arith.constant 0 : i32
    return %arg0, %c0_i32, %c0_i32_0, %c0_i32_1 : i32, i32, i32, i32
  }
}

</mosaic_0001>

<bundles_post_ra>
// kernel: srresnet_forward.1
= control target key start
LH: loop header
LB: loop body
LE: loop exit
PB: predicated region body
PF: predicated region fallthrough
CT: control target
= control target key end

     0   :  { %s5061_s0 = inlined_call_operand.hbm [shape: f32[2,3,16,16], index: 0, kind: input, shape index: {}]   ;;  %s5062_s1 = inlined_call_operand.vmem [shape: f32[1,48], index: 1, kind: input, shape index: {}]   ;;  %s5063_s2 = inlined_call_operand.vmem [shape: f32[9,48,256], index: 2, kind: input, shape index: {}]   ;;  %s5064_s3 = inlined_call_operand.vmem [shape: f32[1,256], index: 3, kind: input, shape index: {}]   ;;  %s5065_s4 = inlined_call_operand.hbm [shape: f32[5,256,128], index: 4, kind: input, shape index: {}]   ;;  %s5066_s5 = inlined_call_operand.vmem [shape: f32[1,128], index: 5, kind: input, shape index: {}]   ;;  %s5067_s6 = inlined_call_operand.vmem [shape: f32[5,128,48], index: 6, kind: input, shape index: {}]   ;;  %s5068_s7 = inlined_call_operand.vmem [shape: f32[1,48], index: 7, kind: input, shape index: {}]   ;;  %s5069_s8 = inlined_call_operand.hbm [shape: f32[2,3,16,16], index: 8, kind: output, shape index: {}]  }
   0x1   :  { %5075 = sst [smem:[#allocation12_spill]] %s5065_s4 }
   0x2   :  { %13 = vsyncpa [#allocation3], 0 }
   0x3   :  { %15 = vsyncpa [#allocation3 + $0x1], 0 }
   0x4   :  { %16 = vsyncpa [#allocation6], 0 }
   0x5   :  { %17 = vsyncpa [#allocation4], 0 }
   0x6   :  { %19 = vsyncpa [#allocation4 + $0x1], 0  ;;  %s3991_s27 = smov 0   ;;  %s3993_s28 = smov 0  }
   0x7   :  { %s3995_s29 = smov 0   ;;  %s3997_s30 = smov 0  }
   0x8 LB: > { %s4012_s9 = sadd.s32 4294967295, %s3932_s30   ;;  %s2600_s10 = sadd.s32 4294967294, %s3932_s30   ;;  %s3932_s30 = sphi %s3997_s30, %s5099_s30   ;;  %s3928_s29 = sphi %s3995_s29, %s5098_s29   ;;  %s3924_s28 = sphi %s3993_s28, %s5097_s28   ;;  %s3920_s27 = sphi %s3991_s27, %s5096_s27  }
   0x9   : > { %p45_p0 = scmp.ne.s32.totalorder %s3924_s28, %s3920_s27  ;;  %p5070_p1 = scmp.eq.s32.totalorder %s4012_s9, 0 }
   0xa   : > { %p222_p3 = scmp.eq.s32.totalorder %s2600_s10, 1  ;;  %p2601_p5 = scmp.ge.s32.totalorder %s3932_s30, 1 }
   0xb   : > { %p4021_p4 = por %p5070_p1, %p45_p0  ;;  %p229_p7 = scmp.lt.s32.totalorder %s3932_s30, 3 }
   0xc   : > { %p4026_p6 = por %p222_p3, %p45_p0  ;;  %s3934_s14 = smov [#allocation5]  }
   0xd   : > { %s5076_s11 = scalar_select %p4021_p4, 1, 0 }
   0xe   : > { %s5077_s12 = scalar_select %p4026_p6, 1, 0 }
   0xf   : > { %p4031_p8 = pnand %p2601_p5, %p229_p7  ;;  %s250_s15 = sshll.u32 %s3934_s14, 4  ;;  %s4035_s15 = int_to_ptr.vmem [resolvable:$true] %s250_s15 }
  0x10   : > { %s4047_s17 = sadd.s32 1, %s3932_s30   ;;  %s32_s18 = sadd.s32 1, %s3928_s29 }
  0x11   : > { %s5078_s13 = scalar_select %p4031_p8, 1, 0 }
  0x12   : > { %p3746_p9 = pneg %p4031_p8  ;;  %s29_s19 = ssub.s32 %s3932_s30, %s4047_s17 }
  0x13   : > { %s5080_s4 = sld [smem:[#allocation12_spill]] }
  0x14   : > { %p4042_p11 = pnand %p3746_p9, %p5070_p1 }
  0x16   : > { %p3806_p13 = pneg %p4042_p11 }
  0x19   : > { %s3804_s22 = scalar_lea.hbm %s5080_s4, 20480 }
  0x1a   : > { %p3805_p12 = scmp.ne.s32.totalorder %s5080_s4, %s3804_s22  ;;  %p3811_p5 = scmp.lt.u32.totalorder %s3804_s22, %s5080_s4 }
  0x1c   : > { %p3807_p0 = pnand %p3806_p13, %p3805_p12 }
  0x1e   : > { %p3808_p3 = pneg %p3807_p0 }
  0x20   : > { %p3813_p7 = pnand %p3811_p5, %p3808_p3 }
  0x22   : > { %3816 = shalt.err (!%p3813_p7)
}
  0x23   : > { %s3817_s10 = scalar_lea.vmem %s4035_s15, 20480  ;;  %p3825_p2 = scmp.lt.s32.totalorder %s4035_s15, %s4035_s15 }
  0x24   : > { %p3818_p9 = scmp.ne.s32.totalorder %s4035_s15, %s3817_s10  ;;  %p3826_p6 = scmp.lt.s32.totalorder %s3817_s10, %s3817_s10 }
  0x26   : > { %p3820_p10 = pnand %p3818_p9, %p3806_p13  ;;  %p3827_p4 = por %p3826_p6, %p3825_p2 }
  0x28   : > { %p3821_p1 = pneg %p3820_p10 }
  0x2a   : > { %p3828_p8 = pnand %p3827_p4, %p3821_p1 }
  0x2c   : > { %3831 = shalt.err (!%p3828_p8)
}
  0x2d   : > { %s5073_s14 = smov 128   ;;  %s5074_s20 = smov 8  }
  0x2e   : > { %3749 = dma.hbm_to_vmem [thread:$0]  (!%p4042_p11), %s5080_s4, 20480, %s4035_s15, [#allocation6], %s5073_s14, %s5073_s14, %s5074_s20  }
  0x2f   : > { %p30_p1 = scmp.eq.s32.totalorder %s29_s19, 0  ;;  %p39_p2 = scmp.ne.s32.totalorder %s3928_s29, %s3924_s28 }
  0x30   : > { %p40_p4 = scmp.eq.s32.totalorder %s3932_s30, 0  ;;  %p3759_p6 = scmp.lt.s32.totalorder %s3932_s30, 2 }
  0x31   : > { %s4081_s23 = scalar_select %p30_p1, %s3928_s29, %s32_s18  }
  0x32   : > { %p41_p8 = por %p40_p4, %p39_p2  ;;  %p5082_p10 = scmp.eq.s32.totalorder %s4012_s9, 1 }
  0x33   : > { %5081 = sst [smem:[#allocation11_spill]] %s4081_s23  ;;  %s273_s16 = sand.u32 1, %s3928_s29  }
  0x34   : > { %p4085_p12 = por %p5082_p10, %p39_p2  ;;  %s3735_s25 = smul.u32 768, %s3932_s30 }
  0x35   : > { %s3734_s26 = smul.u32 48, %s273_s16  ;;  %p4091_p13 = pnand %p3759_p6, %p41_p8 }
  0x36   : > { %s4098_s18 = scalar_lea.hbm %s5061_s0, %s3735_s25  ;;  %s4102_s14 = scalar_lea.sflag [#allocation3], %s273_s16 }
  0x37   : > { %s277_s21 = scalar_lea.vmem [#allocation2], %s3734_s26  ;;  %s3832_s20 = scalar_lea.hbm %s4098_s18, 768 }
  0x38   : > { %s284_s22 = sshll.u32 %s277_s21, 4  ;;  %p3833_p11 = scmp.ne.s32.totalorder %s4098_s18, %s3832_s20  ;;  %s4100_s22 = int_to_ptr.vmem [resolvable:$true] %s284_s22 }
  0x39   : > { %p3834_p0 = pneg %p4091_p13  ;;  %s3837_s19 = scalar_lea.hbm %s5061_s0, 1536 }
  0x3a   : > { %p3838_p7 = scmp.lt.u32.totalorder %s4098_s18, %s5061_s0  ;;  %p3839_p9 = scmp.lt.u32.totalorder %s3837_s19, %s3832_s20 }
  0x3b   : > { %p3835_p3 = pnand %p3834_p0, %p3833_p11  ;;  %p3841_p2 = scmp.lt.u32.totalorder %s3832_s20, %s4098_s18 }
  0x3c   : > { %p3840_p1 = por %p3839_p9, %p3838_p7 }
  0x3d   : > { %p3836_p5 = pneg %p3835_p3 }
  0x3e   : > { %p3842_p4 = por %p3841_p2, %p3840_p1 }
  0x40   : > { %p3843_p6 = pnand %p3842_p4, %p3836_p5 }
  0x42   : > { %3846 = shalt.err (!%p3843_p6)
}
  0x43   : > { %s3847_s16 = scalar_lea.vmem %s4100_s22, 768  ;;  %s3937_s26 = smov [#allocation2]  }
  0x44   : > { %p3848_p8 = scmp.ne.s32.totalorder %s4100_s22, %s3847_s16  ;;  %s3852_s21 = sshll.u32 %s3937_s26, 4  ;;  %s3853_s21 = int_to_ptr.vmem [resolvable:$false] %s3852_s21 }
  0x45   : > { %s3854_s4 = scalar_lea.vmem %s3853_s21, 1536  ;;  %p3855_p3 = scmp.lt.s32.totalorder %s4100_s22, %s3853_s21 }
  0x46   : > { %p3850_p10 = pnand %p3848_p8, %p3834_p0  ;;  %p3856_p7 = scmp.lt.s32.totalorder %s3854_s4, %s3847_s16 }
  0x48   : > { %p3851_p11 = pneg %p3850_p10  ;;  %p3857_p9 = por %p3856_p7, %p3855_p3 }
  0x4a   : > { %p3858_p1 = pnand %p3857_p9, %p3851_p11 }
  0x4c   : > { %3861 = shalt.err (!%p3858_p1)
}
  0x4d   : > { %s5085_s20 = smov 8   ;;  %s5086_s23 = smov 128  }
  0x4e   : > { %3753 = dma.hbm_to_vmem [thread:$0]  (!%p4091_p13), %s4098_s18, 768, %s4100_s22, %s4102_s14, %s5086_s23, %s5086_s23, %s5085_s20  }
  0x4f   : > { %p5087_p0 = scmp.ne.s32.totalorder %s5078_s13, 0 }
  0x50   : > { %s4136_s25 = sand.u32 (!%p5087_p0), 1, %s3924_s28   ;;  %p5088_p5 = scmp.ne.s32.totalorder (!%p5087_p0), %s5076_s11, 0 }
  0x51   : > { %296 = sbr.rel (%p5087_p0) target bundleno = 1302 (0x516), region = 52  ;;  %s299_s19 = scalar_lea.sflag (!%p5087_p0), [#allocation3], %s4136_s25 }
  0x52   : > { %s3736_s15 = smul.u32 (!%p5087_p0), 48, %s4136_s25 }
  0x54   : > { %s4142_s10 = scalar_lea.vmem (!%p5087_p0), [#allocation2], %s3736_s15 }
  0x58   : > { %3907 = dma.done.wait (%p5088_p5), %s299_s19, 768  }
  0x59   : > { %3909 = vsyncadd (%p5088_p5), %s299_s19, 4294966528  ;;  %p5089_p13 = scmp.eq.s32.totalorder %s4012_s9, 0 }
  0x5b   : > { %3911 = dma.done.wait (%p5089_p13), [#allocation6], 20480   ;;  %p5090_p2 = pmov %p5089_p13 }
  0x5c   : > { %v3938_v0 = vmov 0.0   ;;  %v2608_v1 = vld [vmem:[%s4142_s10 + $0x18] sm:$0xff]  ;;  %v2607_v2 = vld [vmem:[%s4142_s10 + $0x10] sm:$0xff]  ;;  %v2610_v3 = vld [vmem:[%s4142_s10 + $0x28] sm:$0xff]  ;;  %s3939_s13 = smov 16   ;;  %s3940_s16 = smov 32  }
  0x5d   : > { %3913 = vsyncadd (%p5090_p2), [#allocation6], 4294946816  ;;  %482 = vmatprep.mubr.f32.mxu0 %v3938_v0  ;;  %351 = vrot.lane.b32.xlu1 %v2608_v1, %s3939_s13  ;;  %v2609_v4 = vld [vmem:[%s4142_s10 + $0x20] sm:$0xff]  ;;  %v401_v5 = vld [vmem:[%s5063_s2 + $0x8] sm:$0xff]  ;;  %vm363_vm0 = vcmask 130048   ;;  %vm366_vm1 = vcmask 261120  }
  0x5e   : > { %349 = vrot.lane.b32.xlu0 %v2607_v2, %s3939_s13  ;;  %v403_v6 = vld [vmem:[%s5063_s2 + $0x18] sm:$0xff]  ;;  %v400_v7 = vld [vmem:[%s5063_s2] sm:$0xff]  ;;  %v402_v8 = vld [vmem:[%s5063_s2 + $0x10] sm:$0xff]  ;;  %vm380_vm2 = vcmask 1043456   ;;  %vm412_vm3 = vcmask 392192   ;;  %vm513_vm4 = vcmask 1046528  }
  0x5f   : > { %v3260_v9 = vpack.c.bf16 %v403_v6, %v401_v5  ;;  %v3262_v10 = vpack.c.bf16 %v402_v8, %v400_v7  ;;  %v405_v11 = vld [vmem:[%s5063_s2 + $0x28] sm:$0xff]  ;;  %v407_v12 = vld [vmem:[%s5063_s2 + $0x38] sm:$0xff]  ;;  %v404_v13 = vld [vmem:[%s5063_s2 + $0x20] sm:$0xff]  ;;  %vm617_vm5 = vcmask 1045504   ;;  %vm721_vm6 = vcmask 1044480   ;;  %s338_s23 = scalar_lea.vmem [#allocation7], %s3736_s15 }
  0x60   : > { %v406_v14 = vld [vmem:[%s5063_s2 + $0x30] sm:$0xff]  ;;  %v3264_v15 = vpack.c.bf16 %v407_v12, %v405_v11  ;;  %v409_v16 = vld [vmem:[%s5063_s2 + $0x48] sm:$0xff]  ;;  %v411_v17 = vld [vmem:[%s5063_s2 + $0x58] sm:$0xff]  ;;  %vm928_vm7 = vcmask 1042432   ;;  %vm1032_vm8 = vcmask 1041408   ;;  %vm1136_vm9 = vcmask 1040384  }
  0x61   : > { %359 = vrot.lane.b32.xlu1 %v2610_v3, %s3940_s16  ;;  %3261 = vmatprep.subr.bf16.mxu0 %v3260_v9  ;;  %v3266_v18 = vpack.c.bf16 %v406_v14, %v404_v13  ;;  %v3268_v19 = vpack.c.bf16 %v411_v17, %v409_v16  ;;  %v408_v20 = vld [vmem:[%s5063_s2 + $0x40] sm:$0xff]  ;;  %v410_v21 = vld [vmem:[%s5063_s2 + $0x50] sm:$0xff]  ;;  %v2615_v22 = vld [vmem:[%s5063_s2 + $0x68] sm:$0xff]  ;;  %s3941_s19 = smov 112   ;;  %s3942_s13 = smov 96  }
  0x62   : > { %357 = vrot.lane.b32.xlu0 %v2609_v4, %s3940_s16  ;;  %3263 = vmatpush1.bf16.msra.mxu0 %v3262_v10  ;;  %v2617_v23 = vld [vmem:[%s5063_s2 + $0x78] sm:$0xff]  ;;  %v3270_v24 = vpack.c.bf16 %v410_v21, %v408_v20  ;;  %v1608_v26 = vld [vmem:[#allocation5 + $0x280] sm:$0xff]  ;;  %v1609_v27 = vld [vmem:[#allocation5 + $0x288] sm:$0xff]  ;;  %s2517_s11 = sshll.u32 %s338_s23, 4  ;;  %s3737_s14 = smul.u32 768, %s4012_s9  ;;  %s5009_s11 = int_to_ptr.vmem [resolvable:$true] %s2517_s11 }
  0x63   : > { %3265 = vmatprep.subr.bf16.mxu0 %v3264_v15  ;;  %v3272_v25 = vpack.c.bf16 %v2617_v23, %v2615_v22  ;;  %v3432_v28 = vpack.c.bf16 %v1609_v27, %v1608_v26  ;;  %v1592_v29 = vld [vmem:[#allocation5 + $0x200] sm:$0xff]  ;;  %v1593_v30 = vld [vmem:[#allocation5 + $0x208] sm:$0xff]  ;;  %v1610_v32 = vld [vmem:[#allocation5 + $0x290] sm:$0xff]  ;;  %s2504_s9 = scalar_lea.sflag [#allocation4], %s4136_s25  ;;  %s3862_s16 = scalar_lea.vmem %s5009_s11, 768 }
  0x64   : > { %v3434_v31 = vpack.c.bf16 %v1593_v30, %v1592_v29  ;;  %v1611_v33 = vld [vmem:[#allocation5 + $0x298] sm:$0xff]  ;;  %v1594_v35 = vld [vmem:[#allocation5 + $0x210] sm:$0xff]  ;;  %v1612_v38 = vld [vmem:[#allocation5 + $0x2a0] sm:$0xff]  ;;  %s5015_s22 = scalar_lea.hbm %s5069_s8, %s3737_s14  ;;  %p3863_p4 = scmp.ne.s32.totalorder %s5009_s11, %s3862_s16 }
  0x65   : > { %3433 = vmatprep.subr.bf16.mxu1 %v3432_v28  ;;  %v3436_v34 = vpack.c.bf16 %v1611_v33, %v1610_v32  ;;  %v1595_v36 = vld [vmem:[#allocation5 + $0x218] sm:$0xff]  ;;  %v1613_v39 = vld [vmem:[#allocation5 + $0x2a8] sm:$0xff]  ;;  %v1596_v41 = vld [vmem:[#allocation5 + $0x220] sm:$0xff]  ;;  %s3943_s26 = smov [#allocation7]  }
  0x66   : > { %3267 = vmatpush1.bf16.msra.mxu0 %v3266_v18  ;;  %3435 = vmatpush3.bf16.msra.mxu1 %v3434_v31  ;;  %v3438_v37 = vpack.c.bf16 %v1595_v36, %v1594_v35  ;;  %v3440_v40 = vpack.c.bf16 %v1613_v39, %v1612_v38  ;;  %v1597_v42 = vld [vmem:[#allocation5 + $0x228] sm:$0xff]  ;;  %v1614_v44 = vld [vmem:[#allocation5 + $0x2b0] sm:$0xff]  ;;  %v1615_v45 = vld [vmem:[#allocation5 + $0x2b8] sm:$0xff]  ;;  %p3864_p6 = pnand %p3863_p4, %p4085_p12  ;;  %s3866_s21 = sshll.u32 %s3943_s26, 4  ;;  %s3867_s21 = int_to_ptr.vmem [resolvable:$false] %s3866_s21 }
  0x67   : > { %3269 = vmatprep.subr.bf16.mxu0 %v3268_v19  ;;  %3437 = vmatprep.subr.bf16.mxu1 %v3436_v34  ;;  %v3442_v43 = vpack.c.bf16 %v1597_v42, %v1596_v41  ;;  %v3444_v46 = vpack.c.bf16 %v1615_v45, %v1614_v44  ;;  %v340_v47 = vld [vmem:[%s4142_s10 + $0x8] sm:$0xff]  ;;  %v1598_v50 = vld [vmem:[#allocation5 + $0x230] sm:$0xff]  ;;  %v2611_v55 = vld [vmem:[%s5062_s1] ss:$0 sm:$0xff]  ;;  %s3868_s4 = scalar_lea.vmem %s3867_s21, 1536  ;;  %p3869_p10 = scmp.lt.s32.totalorder %s5009_s11, %s3867_s21 }
  0x68   : > { %v1599_v51 = vld [vmem:[#allocation5 + $0x238] sm:$0xff]  ;;  %v339_v52 = vld [vmem:[%s4142_s10] sm:$0xff]  ;;  %v2619_v2 = vld [vmem:[%s5063_s2 + $0x88] sm:$0xff]  ;;  %p3865_p8 = pneg %p3864_p6  ;;  %p3870_p11 = scmp.lt.s32.totalorder %s3868_s4, %s3862_s16 }
  0x69   : > { %v3446_v53 = vpack.c.bf16 %v1599_v51, %v1598_v50  ;;  %v2614_v61 = vld [vmem:[%s5063_s2 + $0x60] sm:$0xff]  ;;  %v2616_v62 = vld [vmem:[%s5063_s2 + $0x70] sm:$0xff]  ;;  %v2621_v3 = vld [vmem:[%s5063_s2 + $0x98] sm:$0xff] }
  0x6a   : > { %3271 = vmatpush1.bf16.msra.mxu0 %v3270_v24  ;;  %3439 = vmatpush3.bf16.msra.mxu1 %v3438_v37  ;;  %v3274_v5 = vpack.c.bf16 %v2616_v62, %v2614_v61  ;;  %v3276_v6 = vpack.c.bf16 %v2621_v3, %v2619_v2  ;;  %v2618_v7 = vld [vmem:[%s5063_s2 + $0x80] sm:$0xff]  ;;  %v2620_v8 = vld [vmem:[%s5063_s2 + $0x90] sm:$0xff]  ;;  %v2623_v11 = vld [vmem:[%s5063_s2 + $0xa8] sm:$0xff]  ;;  %p3871_p3 = por %p3870_p11, %p3869_p10 }
  0x6b   : > { %3273 = vmatprep.subr.bf16.mxu0 %v3272_v25  ;;  %3441 = vmatprep.subr.bf16.mxu1 %v3440_v40  ;;  %v2625_v12 = vld [vmem:[%s5063_s2 + $0xb8] sm:$0xff]  ;;  %v3278_v13 = vpack.c.bf16 %v2620_v8, %v2618_v7  ;;  %v2622_v15 = vld [vmem:[%s5063_s2 + $0xa0] sm:$0xff]  ;;  %v2624_v16 = vld [vmem:[%s5063_s2 + $0xb0] sm:$0xff] }
  0x6c   : > { %v3280_v14 = vpack.c.bf16 %v2625_v12, %v2623_v11  ;;  %v2629_v18 = vld [vmem:[%s5063_s2 + $0xc8] sm:$0xff]  ;;  %v2631_v19 = vld [vmem:[%s5063_s2 + $0xd8] sm:$0xff]  ;;  %v3282_v20 = vpack.c.bf16 %v2624_v16, %v2622_v15  ;;  %v2628_v22 = vld [vmem:[%s5063_s2 + $0xc0] sm:$0xff]  ;;  %p3872_p7 = pnand %p3871_p3, %p3865_p8 }
  0x6d   : > { %v3284_v21 = vpack.c.bf16 %v2631_v19, %v2629_v18  ;;  %v2630_v23 = vld [vmem:[%s5063_s2 + $0xd0] sm:$0xff]  ;;  %v2633_v26 = vld [vmem:[%s5063_s2 + $0xe8] sm:$0xff]  ;;  %v2635_v27 = vld [vmem:[%s5063_s2 + $0xf8] sm:$0xff] }
  0x6e   : > { %3443 = vmatpush3.bf16.msra.mxu1 %v3442_v43  ;;  %v3286_v29 = vpack.c.bf16 %v2630_v23, %v2628_v22  ;;  %v3288_v30 = vpack.c.bf16 %v2635_v27, %v2633_v26  ;;  %v2632_v31 = vld [vmem:[%s5063_s2 + $0xe0] sm:$0xff]  ;;  %v2634_v32 = vld [vmem:[%s5063_s2 + $0xf0] sm:$0xff]  ;;  %v2637_v35 = vld [vmem:[%s5063_s2 + $0x108] sm:$0xff] }
  0x6f   : > { %3445 = vmatprep.subr.bf16.mxu1 %v3444_v46  ;;  %v2639_v36 = vld [vmem:[%s5063_s2 + $0x118] sm:$0xff]  ;;  %v3290_v37 = vpack.c.bf16 %v2634_v32, %v2632_v31  ;;  %v2636_v39 = vld [vmem:[%s5063_s2 + $0x100] sm:$0xff]  ;;  %v2638_v40 = vld [vmem:[%s5063_s2 + $0x110] sm:$0xff] }
  0x70   : > { %v3292_v38 = vpack.c.bf16 %v2639_v36, %v2637_v35  ;;  %v2643_v42 = vld [vmem:[%s5063_s2 + $0x128] sm:$0xff]  ;;  %v2645_v43 = vld [vmem:[%s5063_s2 + $0x138] sm:$0xff]  ;;  %v3294_v44 = vpack.c.bf16 %v2638_v40, %v2636_v39  ;;  %v2642_v46 = vld [vmem:[%s5063_s2 + $0x120] sm:$0xff] }
  0x71   : > { %v3296_v45 = vpack.c.bf16 %v2645_v43, %v2643_v42  ;;  %v2647_v50 = vld [vmem:[%s5063_s2 + $0x148] sm:$0xff]  ;;  %v2649_v51 = vld [vmem:[%s5063_s2 + $0x158] sm:$0xff]  ;;  %v2650_v62 = vld [vmem:[%s5063_s2 + $0x160] sm:$0xff] }
  0x72   : > { %3447 = vmatpush3.bf16.msra.mxu1 %v3446_v53  ;;  %v3300_v53 = vpack.c.bf16 %v2649_v51, %v2647_v50  ;;  %v2657_v2 = vld [vmem:[%s5063_s2 + $0x188] sm:$0xff]  ;;  %v2659_v3 = vld [vmem:[%s5063_s2 + $0x198] sm:$0xff]  ;;  %v2658_v7 = vld [vmem:[%s5063_s2 + $0x190] sm:$0xff] }
  0x73   : > { %v2661_v11 = vld [vmem:[%s5063_s2 + $0x1a8] sm:$0xff]  ;;  %v2663_v12 = vld [vmem:[%s5063_s2 + $0x1b8] sm:$0xff]  ;;  %v2660_v15 = vld [vmem:[%s5063_s2 + $0x1a0] sm:$0xff] }
  0x74   : > { %v2662_v16 = vld [vmem:[%s5063_s2 + $0x1b0] sm:$0xff]  ;;  %v2671_v27 = vld [vmem:[%s5063_s2 + $0x1e8] sm:$0xff]  ;;  %v2670_v32 = vld [vmem:[%s5063_s2 + $0x1e0] sm:$0xff] }
  0x75   : > { %v3314_v22 = vpack.c.bf16 %v2662_v16, %v2660_v15  ;;  %v2675_v36 = vld [vmem:[%s5063_s2 + $0x208] sm:$0xff]  ;;  %v2674_v40 = vld [vmem:[%s5063_s2 + $0x200] sm:$0xff]  ;;  %vm4575_vm10 = vmneg %vm1032_vm8 }
  0x76   : > { %v2685_v51 = vld [vmem:[%s5063_s2 + $0x248] sm:$0xff]  ;;  %v2698_v16 = vld [vmem:[%s5063_s2 + $0x2a0] sm:$0xff] }
  0xcf   : > { %v352_v48 = vpop.permute.xlu1 %351 }
  0xd0   : > { %v350_v49 = vpop.permute.xlu0 %349  ;;  %v365_v54 = vsel %vm363_vm0, %v340_v47, %v352_v48  ;;  %v2644_v47 = vld [vmem:[%s5063_s2 + $0x130] sm:$0xff] }
  0xd1   : > { %v364_v56 = vsel %vm363_vm0, %v339_v52, %v350_v49  ;;  %v3298_v52 = vpack.c.bf16 %v2644_v47, %v2642_v46 }
  0xd3   : > { %v360_v57 = vpop.permute.xlu1 %359 }
  0xd4   : > { %v358_v58 = vpop.permute.xlu0 %357  ;;  %v368_v59 = vsel %vm366_vm1, %v365_v54, %v360_v57  ;;  %v2646_v54 = vld [vmem:[%s5063_s2 + $0x140] sm:$0xff] }
  0xd5   : > { %v367_v60 = vsel %vm366_vm1, %v364_v56, %v358_v58  ;;  %v377_v63 = vsub.f32 %v368_v59, %v2611_v55  ;;  %v2651_v58 = vld [vmem:[%s5063_s2 + $0x168] sm:$0xff]  ;;  %v2653_v59 = vld [vmem:[%s5063_s2 + $0x178] sm:$0xff] }
  0xd6   : > { %v376_v1 = vsub.f32 %v367_v60, %v2611_v55  ;;  %v2648_v55 = vld [vmem:[%s5063_s2 + $0x150] sm:$0xff]  ;;  %v3304_v61 = vpack.c.bf16 %v2653_v59, %v2651_v58  ;;  %v2689_v59 = vld [vmem:[%s5063_s2 + $0x268] sm:$0xff] }
  0xd7   : > { %v382_v9 = vrot.slane %v377_v63, 4  ;;  %v3302_v60 = vpack.c.bf16 %v2648_v55, %v2646_v54  ;;  %v2652_v63 = vld [vmem:[%s5063_s2 + $0x170] sm:$0xff]  ;;  %v2684_v55 = vld [vmem:[%s5063_s2 + $0x240] sm:$0xff] }
  0xd8   : > { %v381_v4 = vrot.slane %v376_v1, 4 }
  0xd9   : > { %v4269_v28 = vsel %vm380_vm2, %v382_v9, 0.0 }
  0xda   : > { %v4225_v10 = vsel %vm380_vm2, 0.0, %v381_v4  ;;  %v4243_v17 = vsel %vm380_vm2, %v381_v4, %v382_v9  ;;  %v517_v34 = vrot.slane %v4269_v28, 1  ;;  %v621_v57 = vrot.slane %v4269_v28, 2 }
  0xdb   : > { %2612 = vmatmul.mubr.msk.f32.vlgmr.msra.gmra.mrb[0].mxu0 %vm412_vm3, %v4225_v10  ;;  %v514_v24 = vrot.slane %v4225_v10, 1  ;;  %v515_v25 = vrot.slane %v4243_v17, 1  ;;  %v618_v48 = vrot.slane %v4225_v10, 2  ;;  %v619_v49 = vrot.slane %v4243_v17, 2 }
  0xdc   : > { %3275 = vmatpush1.bf16.msra.mxu0 %v3274_v5  ;;  %488 = vmatprep.mubr.f32.mxu0 %v3938_v0  ;;  %v3306_v4 = vpack.c.bf16 %v2652_v63, %v2650_v62  ;;  %v3308_v5 = vpack.c.bf16 %v2659_v3, %v2657_v2  ;;  %v722_v8 = vrot.slane %v4225_v10, 3  ;;  %v723_v9 = vrot.slane %v4243_v17, 3  ;;  %v2688_v63 = vld [vmem:[%s5063_s2 + $0x260] sm:$0xff] }
  0xdd   : > { %3277 = vmatprep.subr.bf16.mxu0 %v3276_v6  ;;  %v516_v33 = vsel %vm513_vm4, %v514_v24, %v515_v25  ;;  %v518_v41 = vsel %vm513_vm4, %v515_v25, %v517_v34  ;;  %v620_v56 = vsel %vm617_vm5, %v618_v48, %v619_v49  ;;  %v622_v1 = vsel %vm617_vm5, %v619_v49, %v621_v57  ;;  %v2656_v6 = vld [vmem:[%s5063_s2 + $0x180] sm:$0xff]  ;;  %v2666_v25 = vld [vmem:[%s5063_s2 + $0x1d0] sm:$0xff] }
  0xde   : > { %v724_v18 = vsel %vm721_vm6, %v722_v8, %v723_v9  ;;  %v725_v19 = vrot.slane %v4269_v28, 3  ;;  %v2664_v24 = vld [vmem:[%s5063_s2 + $0x1c0] sm:$0xff]  ;;  %v825_v34 = vrot.slane %v4225_v10, 4  ;;  %v826_v35 = vrot.slane %v4243_v17, 4  ;;  %v2680_v49 = vld [vmem:[%s5063_s2 + $0x230] sm:$0xff] }
  0xdf   : > { %2613 = vmatmul.mubr.msk.f32.gmra.mrb[2].mxu0 %vm412_vm3, %v4243_v17  ;;  %v828_v43 = vrot.slane %v4269_v28, 4  ;;  %v2678_v48 = vld [vmem:[%s5063_s2 + $0x220] sm:$0xff]  ;;  %v929_v57 = vrot.slane %v4225_v10, 5  ;;  %v930_v58 = vrot.slane %v4243_v17, 5  ;;  %v932_v3 = vrot.slane %v4269_v28, 5 }
  0xe0   : > { %3279 = vmatpush1.bf16.msra.mxu0 %v3278_v13  ;;  %587 = vmatprep.mubr.f32.mxu0 %v3938_v0  ;;  %v3310_v13 = vpack.c.bf16 %v2658_v7, %v2656_v6  ;;  %v726_v26 = vsel %vm721_vm6, %v723_v9, %v725_v19  ;;  %v827_v42 = vsel %vm380_vm2, %v825_v34, %v826_v35  ;;  %v2692_v8 = vld [vmem:[%s5063_s2 + $0x280] sm:$0xff]  ;;  %v2694_v9 = vld [vmem:[%s5063_s2 + $0x290] sm:$0xff]  ;;  %v1033_v19 = vrot.slane %v4225_v10, 6 }
  0xe1   : > { %3281 = vmatprep.subr.bf16.mxu0 %v3280_v14  ;;  %v3312_v14 = vpack.c.bf16 %v2663_v12, %v2661_v11  ;;  %v829_v50 = vsel %vm380_vm2, %v826_v35, %v828_v43  ;;  %v931_v2 = vsel %vm928_vm7, %v929_v57, %v930_v58  ;;  %v933_v11 = vsel %vm928_vm7, %v930_v58, %v932_v3  ;;  %v2699_v12 = vld [vmem:[%s5063_s2 + $0x2a8] sm:$0xff]  ;;  %v2706_v34 = vld [vmem:[%s5063_s2 + $0x2e0] sm:$0xff]  ;;  %v2708_v35 = vld [vmem:[%s5063_s2 + $0x2f0] sm:$0xff] }
  0xe2   : > { %v1137_v43 = vrot.slane %v4225_v10, 7  ;;  %v2718_v10 = vld [vmem:[%s5063_s2 + $0x330] sm:$0xff]  ;;  %v1373_v3 = vld [vmem:[#allocation5 + $0x98] sm:$0xff] }
  0xe3   : > { %v2722_v57 = vld [vmem:[%s5063_s2 + $0x350] sm:$0xff] }
  0xe4   : > { %3283 = vmatpush1.bf16.msra.mxu0 %v3282_v20  ;;  %v2665_v20 = vld [vmem:[%s5063_s2 + $0x1c8] sm:$0xff] }
  0xe5   : > { %3285 = vmatprep.subr.bf16.mxu0 %v3284_v21  ;;  %v2667_v21 = vld [vmem:[%s5063_s2 + $0x1d8] sm:$0xff] }
  0xe6   : > { %v3316_v23 = vpack.c.bf16 %v2667_v21, %v2665_v20  ;;  %v1034_v20 = vrot.slane %v4243_v17, 6  ;;  %v2703_v21 = vld [vmem:[%s5063_s2 + $0x2c8] sm:$0xff] }
  0xe7   : > { %2626 = vmatmul.mubr.msk.f32.vlgmr.msra.gmra.mrb[0].mxu0 %vm412_vm3, %v516_v33  ;;  %v2672_v33 = vld [vmem:[%s5063_s2 + $0x1f0] sm:$0xff] }
  0xe8   : > { %3287 = vmatpush1.bf16.msra.mxu0 %v3286_v29  ;;  %593 = vmatprep.mubr.f32.mxu0 %v3938_v0  ;;  %v2673_v29 = vld [vmem:[%s5063_s2 + $0x1f8] sm:$0xff] }
  0xe9   : > { %3289 = vmatprep.subr.bf16.mxu0 %v3288_v30  ;;  %v3318_v30 = vpack.c.bf16 %v2666_v25, %v2664_v24  ;;  %v3320_v31 = vpack.c.bf16 %v2673_v29, %v2671_v27  ;;  %v2702_v25 = vld [vmem:[%s5063_s2 + $0x2c0] sm:$0xff]  ;;  %v1035_v27 = vsel %vm1032_vm8, %v1033_v19, %v1034_v20  ;;  %v1036_v29 = vrot.slane %v4269_v28, 6 }
  0xeb   : > { %2627 = vmatmul.mubr.msk.f32.gmra.mrb[2].mxu0 %vm412_vm3, %v518_v41  ;;  %v2676_v41 = vld [vmem:[%s5063_s2 + $0x210] sm:$0xff] }
  0xec   : > { %3291 = vmatpush1.bf16.msra.mxu0 %v3290_v37  ;;  %691 = vmatprep.mubr.f32.mxu0 %v3938_v0  ;;  %v2677_v37 = vld [vmem:[%s5063_s2 + $0x218] sm:$0xff]  ;;  %v3326_v46 = vpack.c.bf16 %v2676_v41, %v2674_v40  ;;  %v2712_v41 = vld [vmem:[%s5063_s2 + $0x300] sm:$0xff] }
  0xed   : > { %3293 = vmatprep.subr.bf16.mxu0 %v3292_v38  ;;  %v3322_v38 = vpack.c.bf16 %v2672_v33, %v2670_v32  ;;  %v3324_v39 = vpack.c.bf16 %v2677_v37, %v2675_v36  ;;  %v1037_v36 = vsel %vm1032_vm8, %v1034_v20, %v1036_v29  ;;  %v2713_v37 = vld [vmem:[%s5063_s2 + $0x308] sm:$0xff]  ;;  %v1360_v20 = vld [vmem:[#allocation5 + $0x30] sm:$0xff] }
  0xf0   : > { %3295 = vmatpush1.bf16.msra.mxu0 %v3294_v44  ;;  %v2679_v44 = vld [vmem:[%s5063_s2 + $0x228] sm:$0xff] }
  0xf1   : > { %3297 = vmatprep.subr.bf16.mxu0 %v3296_v45  ;;  %v2681_v45 = vld [vmem:[%s5063_s2 + $0x238] sm:$0xff] }
  0xf2   : > { %v3328_v47 = vpack.c.bf16 %v2681_v45, %v2679_v44  ;;  %v1138_v44 = vrot.slane %v4243_v17, 7  ;;  %v2717_v45 = vld [vmem:[%s5063_s2 + $0x328] sm:$0xff] }
  0xf3   : > { %2640 = vmatmul.mubr.msk.f32.vlgmr.msra.gmra.mrb[0].mxu0 %vm412_vm3, %v620_v56  ;;  %v2686_v56 = vld [vmem:[%s5063_s2 + $0x250] sm:$0xff] }
  0xf4   : > { %3299 = vmatpush1.bf16.msra.mxu0 %v3298_v52  ;;  %697 = vmatprep.mubr.f32.mxu0 %v3938_v0  ;;  %v2687_v52 = vld [vmem:[%s5063_s2 + $0x258] sm:$0xff] }
  0xf5   : > { %3301 = vmatprep.subr.bf16.mxu0 %v3300_v53  ;;  %v3330_v53 = vpack.c.bf16 %v2680_v49, %v2678_v48  ;;  %v3332_v54 = vpack.c.bf16 %v2687_v52, %v2685_v51  ;;  %v2716_v49 = vld [vmem:[%s5063_s2 + $0x320] sm:$0xff]  ;;  %v1140_v51 = vrot.slane %v4269_v28, 7  ;;  %v2721_v52 = vld [vmem:[%s5063_s2 + $0x348] sm:$0xff] }
  0xf7   : > { %2641 = vmatmul.mubr.msk.f32.gmra.mrb[2].mxu0 %vm412_vm3, %v622_v1  ;;  %v2690_v1 = vld [vmem:[%s5063_s2 + $0x270] sm:$0xff]  ;;  %v1141_v58 = vsel %vm1136_vm9, %v1138_v44, %v1140_v51 }
  0xf8   : > { %3303 = vmatpush1.bf16.msra.mxu0 %v3302_v60  ;;  %795 = vmatprep.mubr.f32.mxu0 %v3938_v0  ;;  %v2691_v60 = vld [vmem:[%s5063_s2 + $0x278] sm:$0xff]  ;;  %v3338_v6 = vpack.c.bf16 %v2690_v1, %v2688_v63  ;;  %v1354_v63 = vld [vmem:[#allocation5] sm:$0xff]  ;;  %v1355_v1 = vld [vmem:[#allocation5 + $0x8] sm:$0xff] }
  0xf9   : > { %3305 = vmatprep.subr.bf16.mxu0 %v3304_v61  ;;  %v3334_v61 = vpack.c.bf16 %v2686_v56, %v2684_v55  ;;  %v3336_v62 = vpack.c.bf16 %v2691_v60, %v2689_v59  ;;  %v2720_v56 = vld [vmem:[%s5063_s2 + $0x340] sm:$0xff]  ;;  %v1371_v60 = vld [vmem:[#allocation5 + $0x88] sm:$0xff] }
  0xfa   : > { %v1370_v59 = vld [vmem:[#allocation5 + $0x80] sm:$0xff] }
  0xfc   : > { %3307 = vmatpush1.bf16.msra.mxu0 %v3306_v4  ;;  %v2693_v4 = vld [vmem:[%s5063_s2 + $0x288] sm:$0xff] }
  0xfd   : > { %3309 = vmatprep.subr.bf16.mxu0 %v3308_v5  ;;  %v2695_v5 = vld [vmem:[%s5063_s2 + $0x298] sm:$0xff] }
  0xfe   : > { %v3340_v7 = vpack.c.bf16 %v2695_v5, %v2693_v4  ;;  %v3370_v4 = vpack.c.bf16 %v1355_v1, %v1354_v63  ;;  %v1605_v63 = vld [vmem:[#allocation5 + $0x268] sm:$0xff] }
  0xff   : > { %2654 = vmatmul.mubr.msk.f32.vlgmr.msra.gmra.mrb[0].mxu0 %vm412_vm3, %v724_v18  ;;  %v2700_v18 = vld [vmem:[%s5063_s2 + $0x2b0] sm:$0xff] }
 0x100   : > { %3311 = vmatpush1.bf16.msra.mxu0 %v3310_v13  ;;  %801 = vmatprep.mubr.f32.mxu0 %v3938_v0  ;;  %v2701_v13 = vld [vmem:[%s5063_s2 + $0x2b8] sm:$0xff] }
 0x101   : > { %3313 = vmatprep.subr.bf16.mxu0 %v3312_v14  ;;  %v3342_v14 = vpack.c.bf16 %v2694_v9, %v2692_v8  ;;  %v3344_v15 = vpack.c.bf16 %v2701_v13, %v2699_v12  ;;  %v1374_v8 = vld [vmem:[#allocation5 + $0xa0] sm:$0xff]  ;;  %v1375_v9 = vld [vmem:[#allocation5 + $0xa8] sm:$0xff] }
 0x102   : > { %v3376_v12 = vpack.c.bf16 %v1375_v9, %v1374_v8  ;;  %v1358_v13 = vld [vmem:[#allocation5 + $0x20] sm:$0xff]  ;;  %v1733_v9 = vld [vmem:[#allocation5 + $0x388] sm:$0xff] }
 0x103   : > { %2655 = vmatmul.mubr.msk.f32.gmra.mrb[2].mxu0 %vm412_vm3, %v726_v26  ;;  %v2704_v26 = vld [vmem:[%s5063_s2 + $0x2d0] sm:$0xff]  ;;  %v1732_v8 = vld [vmem:[#allocation5 + $0x380] sm:$0xff] }
 0x104   : > { %3315 = vmatpush1.bf16.msra.mxu0 %v3314_v22  ;;  %898 = vmatprep.mubr.f32.mxu0 %v3938_v0  ;;  %v2705_v22 = vld [vmem:[%s5063_s2 + $0x2d8] sm:$0xff]  ;;  %v3350_v32 = vpack.c.bf16 %v2704_v26, %v2702_v25  ;;  %v1363_v25 = vld [vmem:[#allocation5 + $0x48] sm:$0xff]  ;;  %v1380_v26 = vld [vmem:[#allocation5 + $0xd0] sm:$0xff] }
 0x105   : > { %3317 = vmatprep.subr.bf16.mxu0 %v3316_v23  ;;  %v3346_v23 = vpack.c.bf16 %v2700_v18, %v2698_v16  ;;  %v3348_v24 = vpack.c.bf16 %v2705_v22, %v2703_v21  ;;  %v1377_v16 = vld [vmem:[#allocation5 + $0xb8] sm:$0xff]  ;;  %v1379_v22 = vld [vmem:[#allocation5 + $0xc8] sm:$0xff] }
 0x106   : > { %v1361_v21 = vld [vmem:[#allocation5 + $0x38] sm:$0xff] }
 0x108   : > { %3319 = vmatpush1.bf16.msra.mxu0 %v3318_v30  ;;  %v2707_v30 = vld [vmem:[%s5063_s2 + $0x2e8] sm:$0xff] }
 0x109   : > { %3321 = vmatprep.subr.bf16.mxu0 %v3320_v31  ;;  %v2709_v31 = vld [vmem:[%s5063_s2 + $0x2f8] sm:$0xff] }
 0x10a   : > { %v3352_v33 = vpack.c.bf16 %v2709_v31, %v2707_v30  ;;  %v1364_v30 = vld [vmem:[#allocation5 + $0x50] sm:$0xff]  ;;  %v1365_v31 = vld [vmem:[#allocation5 + $0x58] sm:$0xff] }
 0x10b   : > { %2668 = vmatmul.mubr.msk.f32.vlgmr.msra.gmra.mrb[0].mxu0 %vm412_vm3, %v827_v42  ;;  %v2714_v42 = vld [vmem:[%s5063_s2 + $0x310] sm:$0xff] }
 0x10c   : > { %3323 = vmatpush1.bf16.msra.mxu0 %v3322_v38  ;;  %904 = vmatprep.mubr.f32.mxu0 %v3938_v0  ;;  %v2715_v38 = vld [vmem:[%s5063_s2 + $0x318] sm:$0xff] }
 0x10d   : > { %3325 = vmatprep.subr.bf16.mxu0 %v3324_v39  ;;  %v3354_v39 = vpack.c.bf16 %v2708_v35, %v2706_v34  ;;  %v3356_v40 = vpack.c.bf16 %v2715_v38, %v2713_v37  ;;  %v1383_v34 = vld [vmem:[#allocation5 + $0xe8] sm:$0xff]  ;;  %v1616_v35 = vld [vmem:[#allocation5 + $0x2c0] sm:$0xff] }
 0x10e   : > { %v1617_v37 = vld [vmem:[#allocation5 + $0x2c8] sm:$0xff]  ;;  %v1366_v38 = vld [vmem:[#allocation5 + $0x60] sm:$0xff] }
 0x10f   : > { %2669 = vmatmul.mubr.msk.f32.gmra.mrb[2].mxu0 %vm412_vm3, %v829_v50  ;;  %v1139_v50 = vsel %vm1136_vm9, %v1137_v43, %v1138_v44  ;;  %v1601_v43 = vld [vmem:[#allocation5 + $0x248] sm:$0xff] }
 0x110   : > { %3327 = vmatpush1.bf16.msra.mxu0 %v3326_v46  ;;  %1002 = vmatprep.mubr.f32.mxu0 %v3938_v0  ;;  %v2719_v46 = vld [vmem:[%s5063_s2 + $0x338] sm:$0xff] }
 0x111   : > { %3329 = vmatprep.subr.bf16.mxu0 %v3328_v47  ;;  %v3358_v47 = vpack.c.bf16 %v2714_v42, %v2712_v41  ;;  %v3360_v48 = vpack.c.bf16 %v2719_v46, %v2717_v45  ;;  %v1600_v42 = vld [vmem:[#allocation5 + $0x240] sm:$0xff]  ;;  %v1384_v45 = vld [vmem:[#allocation5 + $0xf0] sm:$0xff]  ;;  %v1385_v46 = vld [vmem:[#allocation5 + $0xf8] sm:$0xff] }
 0x112   : > { %v3450_v44 = vpack.c.bf16 %v1601_v43, %v1600_v42  ;;  %v4599_v42 = vld [vmem:[#allocation5 + $0x390] sm:$0xff]  ;;  %v4601_v43 = vld [vmem:[#allocation5 + $0x398] sm:$0xff] }
 0x114   : > { %3331 = vmatpush1.bf16.msra.mxu0 %v3330_v53  ;;  %v2723_v53 = vld [vmem:[%s5063_s2 + $0x358] sm:$0xff] }
 0x115   : > { %3333 = vmatprep.subr.bf16.mxu0 %v3332_v54  ;;  %v3362_v54 = vpack.c.bf16 %v2718_v10, %v2716_v49  ;;  %v3364_v55 = vpack.c.bf16 %v2723_v53, %v2721_v52  ;;  %v1619_v49 = vld [vmem:[#allocation5 + $0x2d8] sm:$0xff]  ;;  %v1368_v10 = vld [vmem:[#allocation5 + $0x70] sm:$0xff] }
 0x116   : > { %v1602_v53 = vld [vmem:[#allocation5 + $0x250] sm:$0xff] }
 0x117   : > { %2682 = vmatmul.mubr.msk.f32.vlgmr.msra.gmra.mrb[0].mxu0 %vm412_vm3, %v931_v2  ;;  %v1372_v2 = vld [vmem:[#allocation5 + $0x90] sm:$0xff] }
 0x118   : > { %3335 = vmatpush1.bf16.msra.mxu0 %v3334_v61  ;;  %1008 = vmatprep.mubr.f32.mxu0 %v3938_v0  ;;  %v3366_v61 = vpack.c.bf16 %v2722_v57, %v2720_v56  ;;  %v3372_v5 = vpack.c.bf16 %v1373_v3, %v1372_v2  ;;  %v1480_v56 = vld [vmem:[#allocation5 + $0x180] sm:$0xff]  ;;  %v1481_v57 = vld [vmem:[#allocation5 + $0x188] sm:$0xff]  ;;  %v1622_v2 = vld [vmem:[#allocation5 + $0x2f0] sm:$0xff] }
 0x119   : > { %3337 = vmatprep.subr.bf16.mxu0 %v3336_v62  ;;  %v3368_v62 = vpack.c.bf16 %v1371_v60, %v1370_v59  ;;  %v3400_v59 = vpack.c.bf16 %v1481_v57, %v1480_v56  ;;  %v1621_v60 = vld [vmem:[#allocation5 + $0x2e8] sm:$0xff]  ;;  %v1623_v3 = vld [vmem:[#allocation5 + $0x2f8] sm:$0xff] }
 0x11b   : > { %2683 = vmatmul.mubr.msk.f32.gmra.mrb[2].mxu0 %vm412_vm3, %v933_v11 }
 0x11c   : > { %3339 = vmatpush1.bf16.msra.mxu0 %v3338_v6  ;;  %1106 = vmatprep.mubr.f32.mxu0 %v3938_v0  ;;  %v1356_v6 = vld [vmem:[#allocation5 + $0x10] sm:$0xff] }
 0x11d   : > { %3341 = vmatprep.subr.bf16.mxu0 %v3340_v7  ;;  %v1357_v7 = vld [vmem:[#allocation5 + $0x18] sm:$0xff] }
 0x11e   : > { %v3374_v11 = vpack.c.bf16 %v1357_v7, %v1356_v6  ;;  %v1607_v6 = vld [vmem:[#allocation5 + $0x278] sm:$0xff] }
 0x120   : > { %3343 = vmatpush1.bf16.msra.mxu0 %v3342_v14  ;;  %v1359_v14 = vld [vmem:[#allocation5 + $0x28] sm:$0xff] }
 0x121   : > { %3345 = vmatprep.subr.bf16.mxu0 %v3344_v15  ;;  %v1376_v15 = vld [vmem:[#allocation5 + $0xb0] sm:$0xff]  ;;  %v3378_v18 = vpack.c.bf16 %v1359_v14, %v1358_v13 }
 0x122   : > { %v3380_v19 = vpack.c.bf16 %v1377_v16, %v1376_v15  ;;  %v388_v15 = vld [vmem:[%s5064_s3] sm:$0x3] }
 0x123   : > { %2696 = vmatmul.mubr.msk.f32.vlgmr.msra.gmra.mrb[0].mxu0 %vm412_vm3, %v1035_v27  ;;  %v1381_v27 = vld [vmem:[#allocation5 + $0xd8] sm:$0xff] }
 0x124   : > { %3347 = vmatpush1.bf16.msra.mxu0 %v3346_v23  ;;  %1112 = vmatprep.mubr.f32.mxu0 %v3938_v0 }
 0x125   : > { %3349 = vmatprep.subr.bf16.mxu0 %v3348_v24  ;;  %v1362_v24 = vld [vmem:[#allocation5 + $0x40] sm:$0xff] }
 0x126   : > { %v3386_v29 = vpack.c.bf16 %v1363_v25, %v1362_v24  ;;  %v4579_v24 = vld [vmem:[#allocation5 + $0x110] sm:$0xff] }
 0x127   : > { %2697 = vmatmul.mubr.msk.f32.gmra.mrb[2].mxu0 %vm412_vm3, %v1037_v36 }
 0x128   : > { %3351 = vmatpush1.bf16.msra.mxu0 %v3350_v32  ;;  %1210 = vmatprep.mubr.f32.mxu0 %v3938_v0  ;;  %v3390_v32 = vpack.c.bf16 %v1365_v31, %v1364_v30  ;;  %v4587_v31 = vld [vmem:[#allocation5 + $0x120] sm:$0xff] }
 0x129   : > { %3353 = vmatprep.subr.bf16.mxu0 %v3352_v33  ;;  %v1382_v33 = vld [vmem:[#allocation5 + $0xe0] sm:$0xff] }
 0x12a   : > { %v3392_v36 = vpack.c.bf16 %v1383_v34, %v1382_v33  ;;  %v4591_v33 = vld [vmem:[#allocation5 + $0x300] sm:$0xff] }
 0x12c   : > { %3355 = vmatpush1.bf16.msra.mxu0 %v3354_v39  ;;  %v1367_v39 = vld [vmem:[#allocation5 + $0x68] sm:$0xff] }
 0x12d   : > { %3357 = vmatprep.subr.bf16.mxu0 %v3356_v40  ;;  %v3448_v40 = vpack.c.bf16 %v1617_v37, %v1616_v35  ;;  %v3394_v41 = vpack.c.bf16 %v1367_v39, %v1366_v38  ;;  %v4593_v35 = vld [vmem:[#allocation5 + $0x308] sm:$0xff]  ;;  %v4597_v37 = vld [vmem:[#allocation5 + $0x1b8] sm:$0xff] }
 0x12f   : > { %2710 = vmatmul.mubr.msk.f32.vlgmr.msra.gmra.mrb[0].mxu0 %vm412_vm3, %v1139_v50  ;;  %3449 = vmatprep.subr.bf16.mxu1 %v3448_v40  ;;  %v1369_v50 = vld [vmem:[#allocation5 + $0x78] sm:$0xff] }
 0x130   : > { %3359 = vmatpush1.bf16.msra.mxu0 %v3358_v47  ;;  %1216 = vmatprep.mubr.f32.mxu0 %v3938_v0  ;;  %v1618_v47 = vld [vmem:[#allocation5 + $0x2d0] sm:$0xff]  ;;  %v3398_v52 = vpack.c.bf16 %v1369_v50, %v1368_v10  ;;  %v4609_v10 = vld [vmem:[#allocation5 + $0x138] sm:$0xff] }
 0x131   : > { %3361 = vmatprep.subr.bf16.mxu0 %v3360_v48  ;;  %3451 = vmatpush3.bf16.msra.mxu1 %v3450_v44  ;;  %v3396_v48 = vpack.c.bf16 %v1385_v46, %v1384_v45  ;;  %v3452_v51 = vpack.c.bf16 %v1619_v49, %v1618_v47  ;;  %v4603_v44 = vld [vmem:[#allocation5 + $0x130] sm:$0xff] }
 0x132   : > { %v4611_v50 = vld [vmem:[#allocation5 + $0x310] sm:$0xff] }
 0x133   : > { %2711 = vmatmul.mubr.msk.f32.gmra.mrb[2].mxu0 %vm412_vm3, %v1141_v58  ;;  %3453 = vmatprep.subr.bf16.mxu1 %v3452_v51  ;;  %v1620_v58 = vld [vmem:[#allocation5 + $0x2e0] sm:$0xff]  ;;  %v4613_v51 = vld [vmem:[#allocation5 + $0x318] sm:$0xff] }
 0x134   : > { %3363 = vmatpush1.bf16.msra.mxu0 %v3362_v54  ;;  %1306 = vmatprep.mubr.f32.mxu0 %v3938_v0  ;;  %v1603_v54 = vld [vmem:[#allocation5 + $0x258] sm:$0xff] }
 0x135   : > { %3365 = vmatprep.subr.bf16.mxu0 %v3364_v55  ;;  %v3454_v55 = vpack.c.bf16 %v1603_v54, %v1602_v53 }
 0x137   : > { %3455 = vmatpush3.bf16.msra.mxu1 %v3454_v55  ;;  %v3466_v55 = vpack.c.bf16 %v4593_v35, %v4591_v33  ;;  %v1721_v33 = vld [vmem:[#allocation5 + $0x328] sm:$0xff]  ;;  %v1490_v35 = vld [vmem:[#allocation5 + $0x1d0] sm:$0xff] }
 0x138   : > { %3367 = vmatpush1.bf16.msra.mxu0 %v3366_v61  ;;  %v3456_v61 = vpack.c.bf16 %v1621_v60, %v1620_v58 }
 0x139   : > { %3369 = vmatprep.subr.bf16.mxu0 %v3368_v62  ;;  %v1604_v62 = vld [vmem:[#allocation5 + $0x260] sm:$0xff] }
 0x13a   : > { %v3458_v1 = vpack.c.bf16 %v1605_v63, %v1604_v62  ;;  %3457 = vmatprep.subr.bf16.mxu1 %v3456_v61  ;;  %v3414_v62 = vpack.c.bf16 %v4609_v10, %v4603_v44  ;;  %v3470_v63 = vpack.c.bf16 %v4613_v51, %v4611_v50  ;;  %v1740_v44 = vld [vmem:[#allocation5 + $0x3c0] sm:$0xff]  ;;  %v1741_v10 = vld [vmem:[#allocation5 + $0x3c8] sm:$0xff] }
 0x13b   : > { %2724 = vmatmul.mubr.msk.f32.vlgmr.msra.gmra.mrb[0].mxu0 %vm412_vm3, %v4243_v17  ;;  %v1378_v17 = vld [vmem:[#allocation5 + $0xc0] sm:$0xff] }
 0x13c   : > { %1312 = vmatprep.mubr.f32.mxu0 %v3938_v0  ;;  %3371 = vmatpush3.bf16.msra.mxu0 %v3370_v4  ;;  %v3382_v0 = vpack.c.bf16 %v1361_v21, %v1360_v20  ;;  %v3384_v23 = vpack.c.bf16 %v1379_v22, %v1378_v17  ;;  %v3460_v4 = vpack.c.bf16 %v1623_v3, %v1622_v2  ;;  %v1464_v21 = vld [vmem:[#allocation5 + $0x100] sm:$0xff]  ;;  %v1465_v17 = vld [vmem:[#allocation5 + $0x108] sm:$0xff] }
 0x13d   : > { %3373 = vmatprep.subr.bf16.mxu0 %v3372_v5  ;;  %3459 = vmatpush3.bf16.msra.mxu1 %v3458_v1  ;;  %v1606_v5 = vld [vmem:[#allocation5 + $0x270] sm:$0xff]  ;;  %v3402_v40 = vpack.c.bf16 %v1465_v17, %v1464_v21 }
 0x13e   : > { %v3462_v7 = vpack.c.bf16 %v1607_v6, %v1606_v5  ;;  %3461 = vmatprep.subr.bf16.mxu1 %v3460_v4 }
 0x13f   : > { %2725 = vmatmul.mubr.msk.f32.gmra.mrb[2].mxu0 %vm412_vm3, %v4269_v28  ;;  %v3388_v28 = vpack.c.bf16 %v1381_v27, %v1380_v26  ;;  %v4581_v27 = vld [vmem:[#allocation5 + $0x118] sm:$0xff] }
 0x140   : > { %3375 = vmatpush3.bf16.msra.mxu0 %v3374_v11  ;;  %v3464_v11 = vpack.c.bf16 %v1733_v9, %v1732_v8 }
 0x141   : > { %3377 = vmatprep.subr.bf16.mxu0 %v3376_v12  ;;  %3463 = vmatpush3.bf16.msra.mxu1 %v3462_v7  ;;  %v390_v12 = vlaneseq }
 0x142   : > { %3465 = vmatprep.subr.bf16.mxu1 %v3464_v11 }
 0x143   : > { %v391_v13 = vshrl.u32 %v390_v12, 7 }
 0x144   : > { %3379 = vmatpush3.bf16.msra.mxu0 %v3378_v18 }
 0x145   : > { %3381 = vmatprep.subr.bf16.mxu0 %v3380_v19  ;;  %v392_v14 = vsub.s32 0, %v391_v13  ;;  %v396_v16 = vsub.s32 1, %v391_v13 }
 0x147   : > { %v393_v18 = vrot.slane %v388_v15, %v392_v14  ;;  %v397_v19 = vrot.slane %v388_v15, %v396_v16 }
 0x148   : > { %3383 = vmatpush3.bf16.msra.mxu0 %v3382_v0  ;;  %v1482_v0 = vld [vmem:[#allocation5 + $0x190] sm:$0xff] }
 0x149   : > { %3385 = vmatprep.subr.bf16.mxu0 %v3384_v23  ;;  %v1483_v23 = vld [vmem:[#allocation5 + $0x198] sm:$0xff] }
 0x14c   : > { %3387 = vmatpush3.bf16.msra.mxu0 %v3386_v29  ;;  %v4583_v29 = vld [vmem:[#allocation5 + $0x1a0] sm:$0xff] }
 0x14d   : > { %3389 = vmatprep.subr.bf16.mxu0 %v3388_v28  ;;  %v4585_v28 = vld [vmem:[#allocation5 + $0x1a8] sm:$0xff] }
 0x14e   : > { %v3408_v49 = vpack.c.bf16 %v4585_v28, %v4583_v29  ;;  %v1488_v29 = vld [vmem:[#allocation5 + $0x1c0] sm:$0xff] }
 0x150   : > { %3391 = vmatpush3.bf16.msra.mxu0 %v3390_v32  ;;  %v4589_v32 = vld [vmem:[#allocation5 + $0x128] sm:$0xff] }
 0x151   : > { %3393 = vmatprep.subr.bf16.mxu0 %v3392_v36  ;;  %v4595_v36 = vld [vmem:[#allocation5 + $0x1b0] sm:$0xff]  ;;  %v3410_v54 = vpack.c.bf16 %v4589_v32, %v4587_v31 }
 0x152   : > { %v3412_v58 = vpack.c.bf16 %v4597_v37, %v4595_v36  ;;  %v1738_v36 = vld [vmem:[#allocation5 + $0x3b0] sm:$0xff]  ;;  %v1739_v37 = vld [vmem:[#allocation5 + $0x3b8] sm:$0xff] }
 0x154   : > { %3395 = vmatpush3.bf16.msra.mxu0 %v3394_v41  ;;  %v3404_v41 = vpack.c.bf16 %v1483_v23, %v1482_v0 }
 0x155   : > { %3397 = vmatprep.subr.bf16.mxu0 %v3396_v48  ;;  %v3406_v48 = vpack.c.bf16 %v4581_v27, %v4579_v24 }
 0x158   : > { %3399 = vmatpush3.bf16.msra.mxu0 %v3398_v52 }
 0x159   : > { %3401 = vmatprep.subr.bf16.mxu0 %v3400_v59  ;;  %v3468_v59 = vpack.c.bf16 %v4601_v43, %v4599_v42 }
 0x20e   : > { %v1308_v22 = vpop.f32.mrb[0].mxu0 }
 0x20f   : > { %v3688_v25 = vadd.f32 %v1308_v22, %v393_v18  ;;  %v1310_v26 = vpop.f32.mrb[1].mxu0 }
 0x210   : > { %v3689_v30 = vadd.f32 %v1310_v26, %v397_v19 }
 0x211   : > { %v1323_v34 = vmax.f32 %v3688_v25, 0.0 }
 0x212   : > { %v1324_v38 = vmax.f32 %v3689_v30, 0.0  ;;  %v1314_v39 = vpop.f32.mrb[2].mxu0 }
 0x213   : > { %v1331_v45 = vrot.slane %v1323_v34, 6  ;;  %v3690_v46 = vadd.f32 %v1314_v39, %v393_v18  ;;  %v1316_v47 = vpop.f32.mrb[3].mxu0  ;;  %v1736_v39 = vld [vmem:[#allocation5 + $0x3a0] sm:$0xff] }
 0x214   : > { %v1332_v52 = vrot.slane %v1324_v38, 6  ;;  %v3691_v53 = vadd.f32 %v1316_v47, %v397_v19  ;;  %v1489_v38 = vld [vmem:[#allocation5 + $0x1c8] sm:$0xff] }
 0x215   : > { %v4620_v56 = vsel %vm1032_vm8, 0.0, %v1331_v45  ;;  %v1325_v57 = vmax.f32 %v3690_v46, 0.0 }
 0x216   : > { %v1500_v60 = vrot.slane %v4620_v56, 1  ;;  %v4628_v61 = vsel %vm1032_vm8, 0.0, %v1332_v52  ;;  %2728 = vmatprep.mubr.msk.f32.mxu0 %vm4575_vm10, %v1332_v52  ;;  %v1748_v1 = vrot.slane %v4620_v56, 3  ;;  %v1872_v2 = vrot.slane %v4620_v56, 4 }
 0x217   : > { %v1333_v3 = vrot.slane %v1325_v57, 6  ;;  %v1326_v4 = vmax.f32 %v3691_v53, 0.0  ;;  %2730 = vmatmul.mubr.msk.f32.vlgmr.msra.gmra.mrb[4].mxu0 %vm4575_vm10, %v1331_v45  ;;  %v1503_v5 = vrot.slane %v4628_v61, 1  ;;  %v1627_v6 = vrot.slane %v4628_v61, 2 }
 0x218   : > { %3403 = vmatpush3.bf16.msra.mxu0 %v3402_v40  ;;  %v1624_v7 = vrot.slane %v4620_v56, 2  ;;  %v1751_v8 = vrot.slane %v4628_v61, 3  ;;  %v1875_v13 = vrot.slane %v4628_v61, 4  ;;  %v1737_v40 = vld [vmem:[#allocation5 + $0x3a8] sm:$0xff] }
 0x219   : > { %v4645_v9 = vsel %vm1032_vm8, %v1333_v3, 0.0  ;;  %v1335_v11 = vrot.slane %v1326_v4, 6  ;;  %3405 = vmatprep.subr.bf16.mxu0 %v3404_v41  ;;  %v4648_v12 = vsel %vm1032_vm8, %v1331_v45, %v1333_v3  ;;  %v3472_v61 = vpack.c.bf16 %v1737_v40, %v1736_v39  ;;  %v1472_v3 = vld [vmem:[#allocation5 + $0x140] sm:$0xff]  ;;  %v1473_v4 = vld [vmem:[#allocation5 + $0x148] sm:$0xff] }
 0x21a   : > { %v1625_v14 = vrot.slane %v4648_v12, 2  ;;  %v1630_v15 = vrot.slane %v4645_v9, 2  ;;  %v1501_v16 = vrot.slane %v4648_v12, 1  ;;  %v1506_v18 = vrot.slane %v4645_v9, 1  ;;  %v1745_v39 = vld [vmem:[#allocation5 + $0x3e8] sm:$0xff] }
 0x21b   : > { %v1346_v19 = vsel %vm1032_vm8, %v1335_v11, 0.0  ;;  %v1336_v21 = vsel %vm1032_vm8, %v1332_v52, %v1335_v11  ;;  %v1749_v17 = vrot.slane %v4648_v12, 3  ;;  %v1754_v22 = vrot.slane %v4645_v9, 3 }
 0x21c   : > { %1455 = vmatprep.mubr.f32.mxu0 %v1336_v21  ;;  %3407 = vmatpush3.bf16.msra.mxu0 %v3406_v48  ;;  %v1504_v0 = vrot.slane %v1336_v21, 1  ;;  %v1628_v23 = vrot.slane %v1336_v21, 2  ;;  %v1626_v24 = vsel %vm617_vm5, %v1624_v7, %v1625_v14  ;;  %v1632_v25 = vrot.slane %v1346_v19, 2 }
 0x21d   : > { %1456 = vmatmul.mubr.f32.gmra.mrb[6].mxu0 %v4648_v12  ;;  %3409 = vmatprep.subr.bf16.mxu0 %v3408_v49  ;;  %v1631_v26 = vsel %vm617_vm5, %v1625_v14, %v1630_v15  ;;  %v1752_v27 = vrot.slane %v1336_v21, 3  ;;  %v4663_v28 = vsel %vm513_vm4, %v1500_v60, %v1501_v16  ;;  %v1508_v30 = vrot.slane %v1346_v19, 1  ;;  %v1493_v14 = vld [vmem:[#allocation5 + $0x1e8] sm:$0xff] }
 0x21e   : > { %v1505_v31 = vsel %vm513_vm4, %v1503_v5, %v1504_v0  ;;  %v1629_v32 = vsel %vm617_vm5, %v1627_v6, %v1628_v23  ;;  %v1633_v34 = vsel %vm617_vm5, %v1628_v23, %v1632_v25  ;;  %v4669_v41 = vsel %vm513_vm4, %v1501_v16, %v1506_v18  ;;  %v1477_v15 = vld [vmem:[#allocation5 + $0x168] sm:$0xff]  ;;  %v1724_v16 = vld [vmem:[#allocation5 + $0x340] sm:$0xff] }
 0x21f   : > { %1578 = vmatprep.mubr.f32.mxu0 %v1505_v31  ;;  %1702 = vmatprep.mubr.f32.mxu1 %v1629_v32  ;;  %v1753_v45 = vsel %vm721_vm6, %v1751_v8, %v1752_v27  ;;  %v4673_v46 = vsel %vm513_vm4, %v1504_v0, %v1508_v30  ;;  %v1876_v47 = vrot.slane %v1336_v21, 4  ;;  %v4676_v48 = vsel %vm721_vm6, %v1748_v1, %v1749_v17  ;;  %v1720_v1 = vld [vmem:[#allocation5 + $0x320] sm:$0xff]  ;;  %v1494_v21 = vld [vmem:[#allocation5 + $0x1f0] sm:$0xff]  ;;  %v1743_v0 = vld [vmem:[#allocation5 + $0x3d8] sm:$0xff] }
 0x220   : > { %3411 = vmatpush3.bf16.msra.mxu0 %v3410_v54  ;;  %1703 = vmatmul.mubr.f32.vlgmr.msra.gmra.mrb[0].mxu1 %v1626_v24  ;;  %v1756_v49 = vrot.slane %v1346_v19, 3  ;;  %v4679_v52 = vsel %vm721_vm6, %v1749_v17, %v1754_v22  ;;  %v1873_v53 = vrot.slane %v4648_v12, 4  ;;  %v1880_v57 = vrot.slane %v1346_v19, 4  ;;  %v1723_v12 = vld [vmem:[#allocation5 + $0x338] sm:$0xff]  ;;  %v1725_v19 = vld [vmem:[#allocation5 + $0x348] sm:$0xff]  ;;  %v1742_v22 = vld [vmem:[#allocation5 + $0x3d0] sm:$0xff] }
 0x221   : > { %3467 = vmatpush3.bf16.msra.mxu1 %v3466_v55  ;;  %1707 = vmatprep.mubr.f32.mxu1 %v1633_v34  ;;  %v3416_v60 = vpack.c.bf16 %v1489_v38, %v1488_v29  ;;  %v4686_v54 = vsel %vm380_vm2, %v1875_v13, %v1876_v47  ;;  %v1878_v5 = vrot.slane %v4645_v9, 4  ;;  %v1491_v55 = vld [vmem:[#allocation5 + $0x1d8] sm:$0xff]  ;;  %v3418_v42 = vpack.c.bf16 %v1473_v4, %v1472_v3  ;;  %v1722_v9 = vld [vmem:[#allocation5 + $0x330] sm:$0xff]  ;;  %v1492_v13 = vld [vmem:[#allocation5 + $0x1e0] sm:$0xff] }
 0x222   : > { %3413 = vmatprep.subr.bf16.mxu0 %v3412_v58  ;;  %3469 = vmatprep.subr.bf16.mxu1 %v3468_v59  ;;  %v4696_v6 = vsel %vm721_vm6, %v1752_v27, %v1756_v49  ;;  %v4701_v7 = vsel %vm380_vm2, %v1872_v2, %v1873_v53  ;;  %v4704_v8 = vsel %vm380_vm2, %v1876_v47, %v1880_v57  ;;  %v1474_v59 = vld [vmem:[#allocation5 + $0x150] sm:$0xff]  ;;  %v1475_v2 = vld [vmem:[#allocation5 + $0x158] sm:$0xff]  ;;  %v1856_v32 = vld [vmem:[#allocation5 + $0x480] sm:$0xff] }
 0x223   : > { %v4707_v58 = vsel %vm380_vm2, %v1873_v53, %v1878_v5  ;;  %v3474_v43 = vpack.c.bf16 %v1721_v33, %v1720_v1  ;;  %v3420_v56 = vpack.c.bf16 %v1491_v55, %v1490_v35  ;;  %v3476_v11 = vpack.c.bf16 %v1739_v37, %v1738_v36  ;;  %v1495_v17 = vld [vmem:[#allocation5 + $0x1f8] sm:$0xff]  ;;  %v1726_v29 = vld [vmem:[#allocation5 + $0x350] sm:$0xff]  ;;  %v1857_v34 = vld [vmem:[#allocation5 + $0x488] sm:$0xff] }
 0x224   : > { %3415 = vmatpush3.bf16.msra.mxu0 %v3414_v62  ;;  %1708 = vmatmul.mubr.f32.gmra.mrb[2].mxu1 %v1631_v26  ;;  %v3422_v62 = vpack.c.bf16 %v1475_v2, %v1474_v59  ;;  %v3478_v50 = vpack.c.bf16 %v1723_v12, %v1722_v9  ;;  %v3424_v51 = vpack.c.bf16 %v1493_v14, %v1492_v13  ;;  %v1478_v26 = vld [vmem:[#allocation5 + $0x170] sm:$0xff]  ;;  %v1479_v27 = vld [vmem:[#allocation5 + $0x178] sm:$0xff]  ;;  %v1744_v38 = vld [vmem:[#allocation5 + $0x3e0] sm:$0xff] }
 0x225   : > { %3471 = vmatpush3.bf16.msra.mxu1 %v3470_v63  ;;  %1826 = vmatprep.mubr.f32.mxu1 %v1753_v45  ;;  %v1476_v63 = vld [vmem:[#allocation5 + $0x160] sm:$0xff]  ;;  %v3480_v18 = vpack.c.bf16 %v1741_v10, %v1740_v44  ;;  %v3482_v24 = vpack.c.bf16 %v1725_v19, %v1724_v16  ;;  %v3428_v25 = vpack.c.bf16 %v1495_v17, %v1494_v21  ;;  %v1727_v31 = vld [vmem:[#allocation5 + $0x358] sm:$0xff]  ;;  %v1841_v57 = vld [vmem:[#allocation5 + $0x408] sm:$0xff] }
 0x226   : > { %3417 = vmatprep.subr.bf16.mxu0 %v3416_v60  ;;  %3473 = vmatprep.subr.bf16.mxu1 %v3472_v61  ;;  %v3426_v23 = vpack.c.bf16 %v1477_v15, %v1476_v63  ;;  %v3484_v30 = vpack.c.bf16 %v1743_v0, %v1742_v22  ;;  %v3430_v40 = vpack.c.bf16 %v1479_v27, %v1478_v26  ;;  %v1728_v49 = vld [vmem:[#allocation5 + $0x360] sm:$0xff]  ;;  %v1729_v61 = vld [vmem:[#allocation5 + $0x368] sm:$0xff]  ;;  %v1858_v3 = vld [vmem:[#allocation5 + $0x490] sm:$0xff] }
 0x227   : > { %v3486_v45 = vpack.c.bf16 %v1727_v31, %v1726_v29  ;;  %v3496_v47 = vpack.c.bf16 %v1857_v34, %v1856_v32  ;;  %v1840_v53 = vld [vmem:[#allocation5 + $0x400] sm:$0xff]  ;;  %v3488_v60 = vpack.c.bf16 %v1745_v39, %v1744_v38  ;;  %v1859_v4 = vld [vmem:[#allocation5 + $0x498] sm:$0xff]  ;;  %v1746_v1 = vld [vmem:[#allocation5 + $0x3f0] sm:$0xff]  ;;  %v3490_v35 = vpack.c.bf16 %v1729_v61, %v1728_v49 }
 0x228   : > { %3419 = vmatpush3.bf16.msra.mxu0 %v3418_v42  ;;  %v1747_v5 = vld [vmem:[#allocation5 + $0x3f8] sm:$0xff]  ;;  %v3498_v33 = vpack.c.bf16 %v1841_v57, %v1840_v53  ;;  %v3500_v55 = vpack.c.bf16 %v1859_v4, %v1858_v3  ;;  %v1730_v36 = vld [vmem:[#allocation5 + $0x370] sm:$0xff]  ;;  %v1860_v59 = vld [vmem:[#allocation5 + $0x4a0] sm:$0xff] }
 0x229   : > { %3475 = vmatpush3.bf16.msra.mxu1 %v3474_v43  ;;  %3421 = vmatprep.subr.bf16.mxu0 %v3420_v56  ;;  %v1842_v37 = vld [vmem:[#allocation5 + $0x410] sm:$0xff]  ;;  %v1843_v42 = vld [vmem:[#allocation5 + $0x418] sm:$0xff]  ;;  %v3492_v43 = vpack.c.bf16 %v1747_v5, %v1746_v1  ;;  %v1861_v2 = vld [vmem:[#allocation5 + $0x4a8] sm:$0xff] }
 0x22a   : > { %3477 = vmatprep.subr.bf16.mxu1 %v3476_v11  ;;  %v1731_v56 = vld [vmem:[#allocation5 + $0x378] sm:$0xff]  ;;  %v3502_v9 = vpack.c.bf16 %v1843_v42, %v1842_v37  ;;  %v3504_v12 = vpack.c.bf16 %v1861_v2, %v1860_v59  ;;  %v1844_v13 = vld [vmem:[#allocation5 + $0x420] sm:$0xff]  ;;  %v1845_v14 = vld [vmem:[#allocation5 + $0x428] sm:$0xff] }
 0x22b   : > { %v3494_v11 = vpack.c.bf16 %v1731_v56, %v1730_v36  ;;  %v1862_v44 = vld [vmem:[#allocation5 + $0x4b0] sm:$0xff]  ;;  %v1863_v10 = vld [vmem:[#allocation5 + $0x4b8] sm:$0xff]  ;;  %v1865_v63 = vld [vmem:[#allocation5 + $0x4c8] sm:$0xff] }
 0x22c   : > { %3423 = vmatpush3.bf16.msra.mxu0 %v3422_v62  ;;  %v3506_v62 = vpack.c.bf16 %v1845_v14, %v1844_v13  ;;  %v1866_v19 = vld [vmem:[#allocation5 + $0x4d0] sm:$0xff]  ;;  %v1851_v0 = vld [vmem:[#allocation5 + $0x458] sm:$0xff]  ;;  %v1853_v26 = vld [vmem:[#allocation5 + $0x468] sm:$0xff] }
 0x22d   : > { %3479 = vmatpush3.bf16.msra.mxu1 %v3478_v50  ;;  %3425 = vmatprep.subr.bf16.mxu0 %v3424_v51  ;;  %v1847_v50 = vld [vmem:[#allocation5 + $0x438] sm:$0xff]  ;;  %v1864_v51 = vld [vmem:[#allocation5 + $0x4c0] sm:$0xff]  ;;  %v1850_v22 = vld [vmem:[#allocation5 + $0x450] sm:$0xff] }
 0x22e   : > { %3481 = vmatprep.subr.bf16.mxu1 %v3480_v18  ;;  %v3512_v16 = vpack.c.bf16 %v1865_v63, %v1864_v51  ;;  %v1849_v18 = vld [vmem:[#allocation5 + $0x448] sm:$0xff]  ;;  %v1870_v27 = vld [vmem:[#allocation5 + $0x4f0] sm:$0xff]  ;;  %v1871_v29 = vld [vmem:[#allocation5 + $0x4f8] sm:$0xff] }
 0x22f   : > { %v1854_v31 = vld [vmem:[#allocation5 + $0x470] sm:$0xff]  ;;  %v1855_v32 = vld [vmem:[#allocation5 + $0x478] sm:$0xff]  ;;  %v1982_v38 = vld [vmem:[%s5067_s6] sm:$0xff] }
 0x230   : > { %3427 = vmatpush3.bf16.msra.mxu0 %v3426_v23  ;;  %v1868_v23 = vld [vmem:[#allocation5 + $0x4e0] sm:$0xff]  ;;  %v3526_v34 = vpack.c.bf16 %v1855_v32, %v1854_v31  ;;  %v1983_v39 = vld [vmem:[%s5067_s6 + $0x8] sm:$0xff]  ;;  %v1988_v53 = vld [vmem:[%s5067_s6 + $0x30] sm:$0xff] }
 0x231   : > { %3483 = vmatpush3.bf16.msra.mxu1 %v3482_v24  ;;  %3429 = vmatprep.subr.bf16.mxu0 %v3428_v25  ;;  %v3518_v24 = vpack.c.bf16 %v1851_v0, %v1850_v22  ;;  %v1852_v25 = vld [vmem:[#allocation5 + $0x460] sm:$0xff]  ;;  %v1989_v57 = vld [vmem:[%s5067_s6 + $0x38] sm:$0xff]  ;;  %v1991_v3 = vld [vmem:[%s5067_s6 + $0x48] sm:$0xff] }
 0x232   : > { %3485 = vmatprep.subr.bf16.mxu1 %v3484_v30  ;;  %v3522_v30 = vpack.c.bf16 %v1853_v26, %v1852_v25  ;;  %v1990_v61 = vld [vmem:[%s5067_s6 + $0x40] sm:$0xff]  ;;  %v1992_v1 = vld [vmem:[%s5067_s6 + $0x50] sm:$0xff]  ;;  %v1993_v5 = vld [vmem:[%s5067_s6 + $0x58] sm:$0xff] }
 0x233   : > { %v3544_v4 = vpack.c.bf16 %v1991_v3, %v1990_v61  ;;  %v1996_v37 = vld [vmem:[%s5067_s6 + $0x70] sm:$0xff]  ;;  %v1997_v42 = vld [vmem:[%s5067_s6 + $0x78] sm:$0xff]  ;;  %v2734_v56 = vld [vmem:[%s5067_s6 + $0x80] sm:$0xff] }
 0x234   : > { %3431 = vmatpush3.bf16.msra.mxu0 %v3430_v40  ;;  %v1984_v40 = vld [vmem:[%s5067_s6 + $0x10] sm:$0xff]  ;;  %v2735_v59 = vld [vmem:[%s5067_s6 + $0x88] sm:$0xff]  ;;  %v2726_v63 = vld [vmem:[%s5066_s5] ss:$0 sm:$0xff] }
 0x235   : > { %3487 = vmatpush3.bf16.msra.mxu1 %v3486_v45  ;;  %3497 = vmatprep.subr.bf16.mxu0 %v3496_v47  ;;  %v3528_v45 = vpack.c.bf16 %v1983_v39, %v1982_v38  ;;  %v1987_v47 = vld [vmem:[%s5067_s6 + $0x28] sm:$0xff]  ;;  %v4779_v2 = vpack.c.bf16 %v2735_v59, %v2734_v56 }
 0x236   : > { %3489 = vmatprep.subr.bf16.mxu1 %v3488_v60  ;;  %v3540_v60 = vpack.c.bf16 %v1989_v57, %v1988_v53  ;;  %v2737_v57 = vld [vmem:[%s5067_s6 + $0x98] sm:$0xff]  ;;  %v2739_v61 = vld [vmem:[%s5067_s6 + $0xa8] sm:$0xff] }
 0x237   : > { %1579 = vmatmul.mubr.f32.vlgmr.msra.gmra.mrb[8].mxu0 %v4663_v28  ;;  %v3508_v28 = vpack.c.bf16 %v1863_v10, %v1862_v44 }
 0x238   : > { %1583 = vmatprep.mubr.f32.mxu0 %v4673_v46  ;;  %3499 = vmatpush3.bf16.msra.mxu0 %v3498_v33  ;;  %v1846_v46 = vld [vmem:[#allocation5 + $0x430] sm:$0xff]  ;;  %v3548_v33 = vpack.c.bf16 %v1993_v5, %v1992_v1 }
 0x239   : > { %3491 = vmatpush3.bf16.msra.mxu1 %v3490_v35  ;;  %3501 = vmatprep.subr.bf16.mxu0 %v3500_v55  ;;  %v3510_v15 = vpack.c.bf16 %v1847_v50, %v1846_v46  ;;  %v1994_v35 = vld [vmem:[%s5067_s6 + $0x60] sm:$0xff]  ;;  %v1995_v55 = vld [vmem:[%s5067_s6 + $0x68] sm:$0xff] }
 0x23a   : > { %3493 = vmatprep.subr.bf16.mxu1 %v3492_v43  ;;  %v3552_v36 = vpack.c.bf16 %v1995_v55, %v1994_v35  ;;  %v3556_v43 = vpack.c.bf16 %v1997_v42, %v1996_v37 }
 0x23b   : > { %1584 = vmatmul.mubr.f32.gmra.mrb[10].mxu0 %v4669_v41  ;;  %v1848_v41 = vld [vmem:[#allocation5 + $0x440] sm:$0xff] }
 0x23c   : > { %3503 = vmatpush3.bf16.msra.mxu0 %v3502_v9  ;;  %1950 = vmatprep.mubr.f32.mxu0 %v4686_v54  ;;  %v1867_v54 = vld [vmem:[#allocation5 + $0x4d8] sm:$0xff]  ;;  %v3514_v21 = vpack.c.bf16 %v1849_v18, %v1848_v41 }
 0x23d   : > { %3495 = vmatpush3.bf16.msra.mxu1 %v3494_v11  ;;  %3505 = vmatprep.subr.bf16.mxu0 %v3504_v12  ;;  %v3516_v17 = vpack.c.bf16 %v1867_v54, %v1866_v19 }
 0x23e   : > { %3529 = vmatprep.subr.bf16.mxu1 %v3528_v45 }
 0x240   : > { %1827 = vmatmul.mubr.f32.vlgmr.msra.gmra.mrb[4].mxu1 %v4676_v48  ;;  %3507 = vmatpush3.bf16.msra.mxu0 %v3506_v62  ;;  %v1869_v48 = vld [vmem:[#allocation5 + $0x4e8] sm:$0xff] }
 0x241   : > { %1831 = vmatprep.mubr.f32.mxu1 %v4696_v6  ;;  %3509 = vmatprep.subr.bf16.mxu0 %v3508_v28  ;;  %v3520_v6 = vpack.c.bf16 %v1869_v48, %v1868_v23 }
 0x242   : > { %3531 = vmatpush3.bf16.msra.mxu1 %v3528_v45 }
 0x244   : > { %1832 = vmatmul.mubr.f32.gmra.mrb[6].mxu1 %v4679_v52  ;;  %3511 = vmatpush3.bf16.msra.mxu0 %v3510_v15  ;;  %v3524_v52 = vpack.c.bf16 %v1871_v29, %v1870_v27 }
 0x245   : > { %3513 = vmatprep.subr.bf16.mxu0 %v3512_v16 }
 0x248   : > { %3515 = vmatpush3.bf16.msra.mxu0 %v3514_v21 }
 0x249   : > { %3517 = vmatprep.subr.bf16.mxu0 %v3516_v17 }
 0x24c   : > { %3519 = vmatpush3.bf16.msra.mxu0 %v3518_v24 }
 0x24d   : > { %3521 = vmatprep.subr.bf16.mxu0 %v3520_v6 }
 0x250   : > { %3523 = vmatpush3.bf16.msra.mxu0 %v3522_v30 }
 0x251   : > { %3525 = vmatprep.subr.bf16.mxu0 %v3524_v52 }
 0x254   : > { %3527 = vmatpush3.bf16.msra.mxu0 %v3526_v34 }
 0x257   : > { %1951 = vmatmul.mubr.f32.vlgmr.msra.gmra.mrb[12].mxu0 %v4701_v7  ;;  %v1985_v7 = vld [vmem:[%s5067_s6 + $0x18] sm:$0xff] }
 0x258   : > { %1955 = vmatprep.mubr.f32.mxu0 %v4704_v8  ;;  %v3532_v8 = vpack.c.bf16 %v1985_v7, %v1984_v40 }
 0x25a   : > { %3533 = vmatprep.subr.bf16.mxu1 %v3532_v8 }
 0x25b   : > { %1956 = vmatmul.mubr.f32.gmra.mrb[14].mxu0 %v4707_v58  ;;  %v1986_v58 = vld [vmem:[%s5067_s6 + $0x20] sm:$0xff]  ;;  %3535 = vmatpush3.bf16.msra.mxu1 %v3532_v8 }
 0x25c   : > { %v3536_v49 = vpack.c.bf16 %v1987_v47, %v1986_v58  ;;  %v2736_v47 = vld [vmem:[%s5067_s6 + $0x90] sm:$0xff] }
 0x25e   : > { %3537 = vmatprep.subr.bf16.mxu1 %v3536_v49 }
 0x25f   : > { %3539 = vmatpush3.bf16.msra.mxu1 %v3536_v49 }
 0x260   : > { %3541 = vmatprep.subr.bf16.mxu1 %v3540_v60 }
 0x263   : > { %3543 = vmatpush3.bf16.msra.mxu1 %v3540_v60  ;;  %v2738_v60 = vld [vmem:[%s5067_s6 + $0xa0] sm:$0xff] }
 0x264   : > { %3545 = vmatprep.subr.bf16.mxu1 %v3544_v4  ;;  %v3568_v5 = vpack.c.bf16 %v2739_v61, %v2738_v60  ;;  %v2765_v60 = vld [vmem:[%s5067_s6 + $0x178] sm:$0xff] }
 0x267   : > { %3547 = vmatpush3.bf16.msra.mxu1 %v3544_v4  ;;  %v3564_v4 = vpack.c.bf16 %v2737_v57, %v2736_v47  ;;  %v2762_v47 = vld [vmem:[%s5067_s6 + $0x160] sm:$0xff]  ;;  %v2764_v57 = vld [vmem:[%s5067_s6 + $0x170] sm:$0xff] }
 0x268   : > { %3549 = vmatprep.subr.bf16.mxu1 %v3548_v33  ;;  %v3620_v61 = vpack.c.bf16 %v2765_v60, %v2764_v57 }
 0x26b   : > { %3551 = vmatpush3.bf16.msra.mxu1 %v3548_v33 }
 0x26c   : > { %3553 = vmatprep.subr.bf16.mxu1 %v3552_v36 }
 0x26f   : > { %3555 = vmatpush3.bf16.msra.mxu1 %v3552_v36 }
 0x270   : > { %3557 = vmatprep.subr.bf16.mxu1 %v3556_v43 }
 0x273   : > { %3559 = vmatpush3.bf16.msra.mxu1 %v3556_v43 }
 0x274   : > { %3561 = vmatprep.subr.bf16.mxu1 %v4779_v2 }
 0x2ea   : > { %v2837_v9 = vpop.f32.mrb[4].mxu0 }
 0x2eb   : > { %v2838_v11 = vpop.f32.mrb[5].mxu0 }
 0x2ec   : > { %v2839_v12 = vadd.f32 %v2838_v11, %v2837_v9 }
 0x2ee   : > { %v1461_v41 = vadd.f32 %v2839_v12, %v2726_v63 }
 0x2f0   : > { %v2840_v13 = vpop.f32.mrb[6].mxu0 }
 0x2f1   : > { %v2841_v14 = vpop.f32.mrb[7].mxu0 }
 0x2f2   : > { %v2842_v44 = vadd.f32 %v2841_v14, %v2840_v13 }
 0x2f3   : > { %v2913_v10 = vpop.f32.mrb[0].mxu1 }
 0x2f4   : > { %v2914_v62 = vpop.f32.mrb[1].mxu1  ;;  %v1462_v17 = vadd.f32 %v2842_v44, %v2726_v63 }
 0x2f5   : > { %v2915_v28 = vadd.f32 %v2914_v62, %v2913_v10  ;;  %v2740_v62 = vld [vmem:[%s5067_s6 + $0xb0] sm:$0xff] }
 0x2f7   : > { %v2916_v46 = vpop.f32.mrb[2].mxu1 }
 0x2f8   : > { %v2917_v50 = vpop.f32.mrb[3].mxu1 }
 0x2f9   : > { %v2918_v51 = vadd.f32 %v2917_v50, %v2916_v46 }
 0x30a   : > { %v2875_v15 = vpop.f32.mrb[8].mxu0 }
 0x30b   : > { %v2876_v16 = vpop.f32.mrb[9].mxu0 }
 0x30c   : > { %v2877_v18 = vadd.f32 %v2876_v16, %v2875_v15  ;;  %v2742_v15 = vld [vmem:[%s5067_s6 + $0xc0] sm:$0xff]  ;;  %v2743_v16 = vld [vmem:[%s5067_s6 + $0xc8] sm:$0xff] }
 0x30e   : > { %v1589_v19 = vadd.f32 %v2877_v18, %v1461_v41  ;;  %v2878_v54 = vpop.f32.mrb[10].mxu0  ;;  %v3576_v41 = vpack.c.bf16 %v2743_v16, %v2742_v15  ;;  %v2744_v18 = vld [vmem:[%s5067_s6 + $0xd0] sm:$0xff]  ;;  %v2783_v15 = vld [vmem:[%s5067_s6 + $0x208] sm:$0xff] }
 0x30f   : > { %v2879_v21 = vpop.f32.mrb[11].mxu0 }
 0x310   : > { %v2880_v22 = vadd.f32 %v2879_v21, %v2878_v54  ;;  %v1713_v0 = vadd.f32 %v2915_v28, %v1589_v19  ;;  %v2745_v19 = vld [vmem:[%s5067_s6 + $0xd8] sm:$0xff]  ;;  %v2746_v21 = vld [vmem:[%s5067_s6 + $0xe0] sm:$0xff] }
 0x311   : > { %v3580_v54 = vpack.c.bf16 %v2745_v19, %v2744_v18  ;;  %v2785_v18 = vld [vmem:[%s5067_s6 + $0x218] sm:$0xff] }
 0x312   : > { %v1590_v23 = vadd.f32 %v2880_v22, %v1462_v17  ;;  %v2747_v17 = vld [vmem:[%s5067_s6 + $0xe8] sm:$0xff] }
 0x313   : > { %v2951_v48 = vpop.f32.mrb[4].mxu1  ;;  %v3584_v22 = vpack.c.bf16 %v2747_v17, %v2746_v21  ;;  %v2787_v21 = vld [vmem:[%s5067_s6 + $0x228] sm:$0xff] }
 0x314   : > { %v2952_v24 = vpop.f32.mrb[5].mxu1  ;;  %v1714_v6 = vadd.f32 %v2918_v51, %v1590_v23  ;;  %v2749_v23 = vld [vmem:[%s5067_s6 + $0xf8] sm:$0xff] }
 0x315   : > { %v2953_v25 = vadd.f32 %v2952_v24, %v2951_v48  ;;  %v2750_v24 = vld [vmem:[%s5067_s6 + $0x100] sm:$0xff] }
 0x317   : > { %v1837_v26 = vadd.f32 %v2953_v25, %v1713_v0  ;;  %v2954_v27 = vpop.f32.mrb[6].mxu1  ;;  %v2748_v0 = vld [vmem:[%s5067_s6 + $0xf0] sm:$0xff] }
 0x318   : > { %v2955_v29 = vpop.f32.mrb[7].mxu1  ;;  %v3588_v48 = vpack.c.bf16 %v2749_v23, %v2748_v0  ;;  %v2789_v0 = vld [vmem:[%s5067_s6 + $0x238] sm:$0xff] }
 0x319   : > { %v2956_v30 = vadd.f32 %v2955_v29, %v2954_v27  ;;  %v2753_v27 = vld [vmem:[%s5067_s6 + $0x118] sm:$0xff] }
 0x31b   : > { %v1838_v52 = vadd.f32 %v2956_v30, %v1714_v6  ;;  %v2751_v6 = vld [vmem:[%s5067_s6 + $0x108] sm:$0xff]  ;;  %v2754_v30 = vld [vmem:[%s5067_s6 + $0x120] sm:$0xff] }
 0x31c   : > { %v3592_v25 = vpack.c.bf16 %v2751_v6, %v2750_v24  ;;  %v2792_v24 = vld [vmem:[%s5067_s6 + $0x250] sm:$0xff]  ;;  %v2793_v6 = vld [vmem:[%s5067_s6 + $0x258] sm:$0xff] }
 0x32a   : > { %v2989_v31 = vpop.f32.mrb[12].mxu0 }
 0x32b   : > { %v2990_v32 = vpop.f32.mrb[13].mxu0 }
 0x32c   : > { %v2991_v34 = vadd.f32 %v2990_v32, %v2989_v31  ;;  %v2756_v32 = vld [vmem:[%s5067_s6 + $0x130] sm:$0xff] }
 0x32e   : > { %v1961_v38 = vadd.f32 %v2991_v34, %v1837_v26  ;;  %v2992_v39 = vpop.f32.mrb[14].mxu0  ;;  %v2752_v26 = vld [vmem:[%s5067_s6 + $0x110] sm:$0xff]  ;;  %v2757_v34 = vld [vmem:[%s5067_s6 + $0x138] sm:$0xff] }
 0x32f   : > { %v2993_v40 = vpop.f32.mrb[15].mxu0  ;;  %v3596_v29 = vpack.c.bf16 %v2753_v27, %v2752_v26  ;;  %v2794_v26 = vld [vmem:[%s5067_s6 + $0x260] sm:$0xff]  ;;  %v2795_v27 = vld [vmem:[%s5067_s6 + $0x268] sm:$0xff] }
 0x330   : > { %v1963_v45 = vmax.f32 %v1961_v38, 0.0  ;;  %v2994_v7 = vadd.f32 %v2993_v40, %v2992_v39  ;;  %v3604_v38 = vpack.c.bf16 %v2757_v34, %v2756_v32  ;;  %v2758_v39 = vld [vmem:[%s5067_s6 + $0x140] sm:$0xff]  ;;  %v2759_v40 = vld [vmem:[%s5067_s6 + $0x148] sm:$0xff] }
 0x331   : > { %v2731_v32 = vld [vmem:[%s5068_s7] ss:$0 sm:$0xff] }
 0x332   : > { %v1967_v8 = vrot.slane %v1963_v45, 6  ;;  %v1962_v58 = vadd.f32 %v2994_v7, %v1838_v52  ;;  %v2755_v52 = vld [vmem:[%s5067_s6 + $0x128] sm:$0xff]  ;;  %v3608_v45 = vpack.c.bf16 %v2759_v40, %v2758_v39  ;;  %v2760_v7 = vld [vmem:[%s5067_s6 + $0x150] sm:$0xff] }
 0x333   : > { %v3600_v31 = vpack.c.bf16 %v2755_v52, %v2754_v30  ;;  %v2796_v30 = vld [vmem:[%s5067_s6 + $0x270] sm:$0xff]  ;;  %v2797_v52 = vld [vmem:[%s5067_s6 + $0x278] sm:$0xff] }
 0x334   : > { %v1973_v49 = vsel %vm1032_vm8, 0.0, %v1967_v8  ;;  %v1964_v53 = vmax.f32 %v1962_v58, 0.0  ;;  %3117 = vmatprep.mubr.msk.f32.mxu1 %vm4575_vm10, %v1967_v8 }
 0x335   : > { %v2094_v1 = vrot.slane %v1973_v49, 1  ;;  %v2195_v33 = vrot.slane %v1973_v49, 2  ;;  %v2296_v55 = vrot.slane %v1973_v49, 3  ;;  %v2397_v36 = vrot.slane %v1973_v49, 4  ;;  %v2763_v49 = vld [vmem:[%s5067_s6 + $0x168] sm:$0xff] }
 0x336   : > { %v1968_v3 = vrot.slane %v1964_v53, 6  ;;  %v3616_v53 = vpack.c.bf16 %v2763_v49, %v2762_v47 }
 0x338   : > { %v1974_v20 = vsel %vm1032_vm8, %v1968_v3, 0.0  ;;  %v1969_v35 = vsel %vm1032_vm8, %v1967_v8, %v1968_v3  ;;  %v2761_v8 = vld [vmem:[%s5067_s6 + $0x158] sm:$0xff]  ;;  %v2766_v3 = vld [vmem:[%s5067_s6 + $0x180] sm:$0xff] }
 0x339   : > { %3118 = vmatmul.mubr.f32.vlgmr.msra.gmra.mrb[8].mxu1 %v1969_v35  ;;  %v2095_v37 = vrot.slane %v1969_v35, 1  ;;  %v2097_v42 = vrot.slane %v1974_v20, 1  ;;  %v2196_v43 = vrot.slane %v1969_v35, 2  ;;  %v2198_v56 = vrot.slane %v1974_v20, 2 }
 0x33a   : > { %3563 = vmatpush3.bf16.msra.mxu1 %v4779_v2  ;;  %v2297_v59 = vrot.slane %v1969_v35, 3  ;;  %v2299_v9 = vrot.slane %v1974_v20, 3  ;;  %v2398_v11 = vrot.slane %v1969_v35, 4  ;;  %v2400_v12 = vrot.slane %v1974_v20, 4  ;;  %v2741_v2 = vld [vmem:[%s5067_s6 + $0xb8] sm:$0xff]  ;;  %v2770_v35 = vld [vmem:[%s5067_s6 + $0x1a0] sm:$0xff] }
 0x33b   : > { %3565 = vmatprep.subr.bf16.mxu1 %v3564_v4  ;;  %v2096_v13 = vsel %vm513_vm4, %v2094_v1, %v2095_v37  ;;  %v2098_v14 = vsel %vm513_vm4, %v2095_v37, %v2097_v42  ;;  %v2197_v44 = vsel %vm617_vm5, %v2195_v33, %v2196_v43  ;;  %v4807_v10 = vsel %vm617_vm5, %v2196_v43, %v2198_v56  ;;  %v2769_v33 = vld [vmem:[%s5067_s6 + $0x198] sm:$0xff]  ;;  %v2772_v37 = vld [vmem:[%s5067_s6 + $0x1b0] sm:$0xff]  ;;  %v2774_v56 = vld [vmem:[%s5067_s6 + $0x1c0] sm:$0xff] }
 0x33c   : > { %3152 = vmatprep.mubr.f32.mxu1 %v2096_v13  ;;  %v4816_v28 = vsel %vm721_vm6, %v2296_v55, %v2297_v59  ;;  %v4819_v46 = vsel %vm721_vm6, %v2297_v59, %v2299_v9  ;;  %v4822_v50 = vsel %vm380_vm2, %v2397_v36, %v2398_v11  ;;  %v4825_v51 = vsel %vm380_vm2, %v2398_v11, %v2400_v12  ;;  %v2771_v55 = vld [vmem:[%s5067_s6 + $0x1a8] sm:$0xff]  ;;  %v2773_v42 = vld [vmem:[%s5067_s6 + $0x1b8] sm:$0xff]  ;;  %v2776_v11 = vld [vmem:[%s5067_s6 + $0x1d0] sm:$0xff] }
 0x33d   : > { %v3572_v63 = vpack.c.bf16 %v2741_v2, %v2740_v62  ;;  %v3612_v58 = vpack.c.bf16 %v2761_v8, %v2760_v7  ;;  %v3632_v36 = vpack.c.bf16 %v2771_v55, %v2770_v35  ;;  %v3636_v43 = vpack.c.bf16 %v2773_v42, %v2772_v37  ;;  %v2775_v59 = vld [vmem:[%s5067_s6 + $0x1c8] sm:$0xff]  ;;  %v2777_v12 = vld [vmem:[%s5067_s6 + $0x1d8] sm:$0xff]  ;;  %v2780_v62 = vld [vmem:[%s5067_s6 + $0x1f0] sm:$0xff] }
 0x33e   : > { %3567 = vmatpush3.bf16.msra.mxu1 %v3564_v4  ;;  %v2767_v4 = vld [vmem:[%s5067_s6 + $0x188] sm:$0xff]  ;;  %v3640_v9 = vpack.c.bf16 %v2775_v59, %v2774_v56  ;;  %v3644_v13 = vpack.c.bf16 %v2777_v12, %v2776_v11  ;;  %v2781_v2 = vld [vmem:[%s5067_s6 + $0x1f8] sm:$0xff] }
 0x33f   : > { %3569 = vmatprep.subr.bf16.mxu1 %v3568_v5  ;;  %v3624_v1 = vpack.c.bf16 %v2767_v4, %v2766_v3 }
 0x342   : > { %3571 = vmatpush3.bf16.msra.mxu1 %v3568_v5  ;;  %v2768_v5 = vld [vmem:[%s5067_s6 + $0x190] sm:$0xff] }
 0x343   : > { %3573 = vmatprep.subr.bf16.mxu1 %v3572_v63  ;;  %v3628_v20 = vpack.c.bf16 %v2769_v33, %v2768_v5 }
 0x346   : > { %3575 = vmatpush3.bf16.msra.mxu1 %v3572_v63  ;;  %v2782_v63 = vld [vmem:[%s5067_s6 + $0x200] sm:$0xff] }
 0x347   : > { %3577 = vmatprep.subr.bf16.mxu1 %v3576_v41  ;;  %v3656_v16 = vpack.c.bf16 %v2783_v15, %v2782_v63 }
 0x34a   : > { %3579 = vmatpush3.bf16.msra.mxu1 %v3576_v41  ;;  %v2784_v41 = vld [vmem:[%s5067_s6 + $0x210] sm:$0xff] }
 0x34b   : > { %3581 = vmatprep.subr.bf16.mxu1 %v3580_v54  ;;  %v3660_v19 = vpack.c.bf16 %v2785_v18, %v2784_v41 }
 0x34e   : > { %3583 = vmatpush3.bf16.msra.mxu1 %v3580_v54  ;;  %v2786_v54 = vld [vmem:[%s5067_s6 + $0x220] sm:$0xff] }
 0x34f   : > { %3585 = vmatprep.subr.bf16.mxu1 %v3584_v22  ;;  %v3664_v17 = vpack.c.bf16 %v2787_v21, %v2786_v54 }
 0x352   : > { %3587 = vmatpush3.bf16.msra.mxu1 %v3584_v22  ;;  %v2788_v22 = vld [vmem:[%s5067_s6 + $0x230] sm:$0xff] }
 0x353   : > { %3589 = vmatprep.subr.bf16.mxu1 %v3588_v48  ;;  %v3668_v23 = vpack.c.bf16 %v2789_v0, %v2788_v22 }
 0x356   : > { %3591 = vmatpush3.bf16.msra.mxu1 %v3588_v48 }
 0x357   : > { %3593 = vmatprep.subr.bf16.mxu1 %v3592_v25 }
 0x359   : > { %3153 = vmatmul.mubr.f32.vlgmr.msra.gmra.mrb[8].mxu1 %v2098_v14  ;;  %v2778_v14 = vld [vmem:[%s5067_s6 + $0x1e0] sm:$0xff] }
 0x35a   : > { %3595 = vmatpush3.bf16.msra.mxu1 %v3592_v25  ;;  %3187 = vmatprep.mubr.f32.mxu1 %v2197_v44  ;;  %v2779_v44 = vld [vmem:[%s5067_s6 + $0x1e8] sm:$0xff]  ;;  %v3676_v25 = vpack.c.bf16 %v2793_v6, %v2792_v24 }
 0x35b   : > { %3597 = vmatprep.subr.bf16.mxu1 %v3596_v29 }
 0x35e   : > { %3599 = vmatpush3.bf16.msra.mxu1 %v3596_v29  ;;  %v3680_v29 = vpack.c.bf16 %v2795_v27, %v2794_v26 }
 0x35f   : > { %3601 = vmatprep.subr.bf16.mxu1 %v3600_v31 }
 0x362   : > { %3603 = vmatpush3.bf16.msra.mxu1 %v3600_v31  ;;  %v3684_v31 = vpack.c.bf16 %v2797_v52, %v2796_v30 }
 0x363   : > { %3605 = vmatprep.subr.bf16.mxu1 %v3604_v38 }
 0x366   : > { %3607 = vmatpush3.bf16.msra.mxu1 %v3604_v38 }
 0x367   : > { %3609 = vmatprep.subr.bf16.mxu1 %v3608_v45 }
 0x36a   : > { %3611 = vmatpush3.bf16.msra.mxu1 %v3608_v45 }
 0x36b   : > { %3613 = vmatprep.subr.bf16.mxu1 %v3612_v58 }
 0x36e   : > { %3615 = vmatpush3.bf16.msra.mxu1 %v3612_v58 }
 0x36f   : > { %3617 = vmatprep.subr.bf16.mxu1 %v3616_v53 }
 0x372   : > { %3619 = vmatpush3.bf16.msra.mxu1 %v3616_v53 }
 0x373   : > { %3621 = vmatprep.subr.bf16.mxu1 %v3620_v61 }
 0x376   : > { %3623 = vmatpush3.bf16.msra.mxu1 %v3620_v61 }
 0x377   : > { %3625 = vmatprep.subr.bf16.mxu1 %v3624_v1 }
 0x379   : > { %3188 = vmatmul.mubr.f32.vlgmr.msra.gmra.mrb[8].mxu1 %v4807_v10  ;;  %v3648_v10 = vpack.c.bf16 %v2779_v44, %v2778_v14 }
 0x37a   : > { %3627 = vmatpush3.bf16.msra.mxu1 %v3624_v1  ;;  %3222 = vmatprep.mubr.f32.mxu1 %v4816_v28  ;;  %v3652_v28 = vpack.c.bf16 %v2781_v2, %v2780_v62 }
 0x37b   : > { %3629 = vmatprep.subr.bf16.mxu1 %v3628_v20 }
 0x37e   : > { %3631 = vmatpush3.bf16.msra.mxu1 %v3628_v20 }
 0x37f   : > { %3633 = vmatprep.subr.bf16.mxu1 %v3632_v36 }
 0x382   : > { %3635 = vmatpush3.bf16.msra.mxu1 %v3632_v36 }
 0x383   : > { %3637 = vmatprep.subr.bf16.mxu1 %v3636_v43 }
 0x386   : > { %3639 = vmatpush3.bf16.msra.mxu1 %v3636_v43 }
 0x387   : > { %3641 = vmatprep.subr.bf16.mxu1 %v3640_v9 }
 0x38a   : > { %3643 = vmatpush3.bf16.msra.mxu1 %v3640_v9 }
 0x38b   : > { %3645 = vmatprep.subr.bf16.mxu1 %v3644_v13 }
 0x38e   : > { %3647 = vmatpush3.bf16.msra.mxu1 %v3644_v13 }
 0x38f   : > { %3649 = vmatprep.subr.bf16.mxu1 %v3648_v10 }
 0x392   : > { %3651 = vmatpush3.bf16.msra.mxu1 %v3648_v10 }
 0x393   : > { %3653 = vmatprep.subr.bf16.mxu1 %v3652_v28 }
 0x396   : > { %3655 = vmatpush3.bf16.msra.mxu1 %v3652_v28 }
 0x397   : > { %3657 = vmatprep.subr.bf16.mxu1 %v3656_v16 }
 0x399   : > { %3223 = vmatmul.mubr.f32.vlgmr.msra.gmra.mrb[8].mxu1 %v4819_v46  ;;  %v2790_v46 = vld [vmem:[%s5067_s6 + $0x240] sm:$0xff] }
 0x39a   : > { %3659 = vmatpush3.bf16.msra.mxu1 %v3656_v16  ;;  %3257 = vmatprep.mubr.f32.mxu1 %v4822_v50  ;;  %v2791_v50 = vld [vmem:[%s5067_s6 + $0x248] sm:$0xff] }
 0x39b   : > { %3661 = vmatprep.subr.bf16.mxu1 %v3660_v19  ;;  %v3672_v48 = vpack.c.bf16 %v2791_v50, %v2790_v46 }
 0x39e   : > { %3663 = vmatpush3.bf16.msra.mxu1 %v3660_v19 }
 0x39f   : > { %3665 = vmatprep.subr.bf16.mxu1 %v3664_v17 }
 0x3a2   : > { %3667 = vmatpush3.bf16.msra.mxu1 %v3664_v17 }
 0x3a3   : > { %3669 = vmatprep.subr.bf16.mxu1 %v3668_v23 }
 0x3a6   : > { %3671 = vmatpush3.bf16.msra.mxu1 %v3668_v23 }
 0x3a7   : > { %3673 = vmatprep.subr.bf16.mxu1 %v3672_v48 }
 0x3aa   : > { %3675 = vmatpush3.bf16.msra.mxu1 %v3672_v48 }
 0x3ab   : > { %3677 = vmatprep.subr.bf16.mxu1 %v3676_v25 }
 0x3ae   : > { %3679 = vmatpush3.bf16.msra.mxu1 %v3676_v25 }
 0x3af   : > { %3681 = vmatprep.subr.bf16.mxu1 %v3680_v29 }
 0x3b2   : > { %3683 = vmatpush3.bf16.msra.mxu1 %v3680_v29 }
 0x3b3   : > { %3685 = vmatprep.subr.bf16.mxu1 %v3684_v31 }
 0x3b6   : > { %3687 = vmatpush3.bf16.msra.mxu1 %v3684_v31 }
 0x3b9   : > { %3258 = vmatmul.mubr.f32.vlgmr.msra.gmra.mrb[8].mxu1 %v4825_v51 }
 0x48c   : > { %v3259_v34 = vpop.f32.mrb[8].mxu1 }
 0x48d   : > { %v3692_v38 = vadd.f32 %v3259_v34, %v2731_v32  ;;  %v2470_v39 = vpop.f32.mrb[9].mxu1 }
 0x48e   : > { %v3693_v40 = vadd.f32 %v2731_v32, %v2470_v39 }
 0x48f   : > { %2482 = vst.msk [vmem:[%s338_s23 + $0x8] sm:$0xff] %vm363_vm0, %v3692_v38  ;;  %2487 = vrot.lane.b32.xlu1 %v3692_v38, %s3941_s19 }
 0x490   : > { %2481 = vst.msk [vmem:[%s338_s23] sm:$0xff] %vm363_vm0, %v3693_v40  ;;  %2485 = vrot.lane.b32.xlu0 %v3693_v40, %s3941_s19 }
 0x493   : > { %2496 = vrot.lane.b32.xlu1 %v3692_v38, %s3942_s13 }
 0x494   : > { %2494 = vrot.lane.b32.xlu0 %v3693_v40, %s3942_s13 }
 0x501   : > { %v2488_v51 = vpop.permute.xlu1 %2487 }
 0x502   : > { %2799 = vst.msk [vmem:[%s338_s23 + $0x18] sm:$0xff] %vm363_vm0, %v2488_v51  ;;  %v2486_v45 = vpop.permute.xlu0 %2485 }
 0x503   : > { %2798 = vst.msk [vmem:[%s338_s23 + $0x10] sm:$0xff] %vm363_vm0, %v2486_v45 }
 0x505   : > { %v2497_v7 = vpop.permute.xlu1 %2496 }
 0x506   : > { %2801 = vst.msk [vmem:[%s338_s23 + $0x28] sm:$0xff] %vm363_vm0, %v2497_v7  ;;  %v2495_v8 = vpop.permute.xlu0 %2494 }
 0x507   : > { %2800 = vst.msk [vmem:[%s338_s23 + $0x20] sm:$0xff] %vm363_vm0, %v2495_v8 }
 0x508   : > { %3875 = shalt.err (!%p3872_p7)
}
 0x509   : > { %s3876_s20 = scalar_lea.hbm %s5015_s22, 768  ;;  %s3880_s19 = scalar_lea.hbm %s5069_s8, 1536 }
 0x50a   : > { %p3877_p9 = scmp.ne.s32.totalorder %s5015_s22, %s3876_s20  ;;  %p3881_p5 = scmp.lt.u32.totalorder %s5015_s22, %s5069_s8 }
 0x50b   : > { %p3882_p13 = scmp.lt.u32.totalorder %s3880_s19, %s3876_s20  ;;  %p3884_p4 = scmp.lt.u32.totalorder %s3876_s20, %s5015_s22 }
 0x50c   : > { %p3878_p1 = pnand %p3877_p9, %p4085_p12 }
 0x50d   : > { %p3883_p2 = por %p3882_p13, %p3881_p5 }
 0x50e   : > { %p3879_p0 = pneg %p3878_p1 }
 0x50f   : > { %p3885_p6 = por %p3884_p4, %p3883_p2 }
 0x511   : > { %p3886_p8 = pnand %p3885_p6, %p3879_p0 }
 0x513   : > { %3889 = shalt.err (!%p3886_p8)
}
 0x514   : > { %s3944_s15 = smov 128   ;;  %s3945_s18 = smov 8  }
 0x515   : > { %3744 = dma.vmem_to_hbm [thread:$0]  (%p4085_p12), %s5009_s11, 768, %s5015_s22, %s2504_s9, %s3944_s15, %s3944_s15, %s3945_s18  }
 0x516 PF: > { %s2532_s16 = sand.u32 1, %s3920_s27   ;;  %p5093_p10 = scmp.ne.s32.totalorder %s5077_s12, 0 }
 0x517   : > { %p5094_p11 = scmp.ge.s32.totalorder %s3932_s30, 2  ;;  %s2533_s26 = scalar_lea.sflag [#allocation4], %s2532_s16 }
 0x519   : > { %p3755_p3 = pnand %p5094_p11, %p5093_p10 }
 0x51b   : > { %3915 = dma.done.wait (!%p3755_p3), %s2533_s26, 768  }
 0x51c   : > { %3917 = vsyncadd (!%p3755_p3), %s2533_s26, 4294966528  ;;  %s5095_s21 = sld [smem:[#allocation11_spill]]  ;;  %p22_p7 = scmp.ge.s32.totalorder %s4047_s17, 4  }
 0x51d   : > { %s5096_s27 = smov %s3924_s28  ;;  %s5097_s28 = smov %s3928_s29 }
 0x51e   : > { %s5099_s30 = smov %s4047_s17  ;;  %24 = sbr.rel (!%p22_p7) target bundleno = 8 (0x8), region = 121 }
 0x522   : > { %s5098_s29 = smov %s5095_s21 }
 0x525   :  { %2538 = vsyncpa [#allocation3], 1 }
 0x526   :  { %2540 = vsyncpa [#allocation3 + $0x1], 1 }
 0x527   :  { %2541 = vsyncpa [#allocation6], 1 }
 0x528   :  { %2542 = vsyncpa [#allocation4], 1 }
 0x529   :  { %2544 = vsyncpa [#allocation4 + $0x1], 1 }

</bundles_post_ra>
